<compile_context>
chip_gen: v7x
topology: tpu7x:2x2x1
jax: 0.10.0
libtpu: 0.0.40
codegen_flags: <defaults>
</compile_context>

<pallas_src>
import functools

import numpy as np
import jax
import jax.numpy as jnp
from jax.experimental import pallas as pl
from jax.experimental.pallas import tpu as pltpu

# ----------------------- SingleSrcPMSQE 16 kHz constants ----------------------
SP = 6.910853e-06
SL = 0.1866055
NBINS = 512
NBARK = 49
ALPHA = 0.1
BETA = 0.309 * ALPHA
EPS = 1e-08
WIN_LEN = 512
HOP = 128
F = NBINS // 2 + 1          # 257 frequency bins
FPAD = 384                  # 257 padded up to a lane-aligned multiple of 128
NB64 = 64                   # bark-domain lane width (49 bands + fsum col + pad)

ABS_THRESH_POWER = np.array(
    [51286152.0, 2454709.5, 70794.59375, 4897.788574, 1174.897705, 389.045166,
     104.71286, 45.70882, 17.782795, 9.772372, 4.897789, 3.090296, 1.905461,
     1.258925, 0.977237, 0.724436, 0.562341, 0.457088, 0.389045, 0.331131,
     0.295121, 0.269153, 0.25704, 0.251189, 0.251189, 0.251189, 0.251189,
     0.263027, 0.288403, 0.30903, 0.338844, 0.371535, 0.398107, 0.436516,
     0.467735, 0.489779, 0.501187, 0.501187, 0.512861, 0.524807, 0.524807,
     0.524807, 0.512861, 0.47863, 0.42658, 0.371535, 0.363078, 0.416869,
     0.537032], dtype=np.float32)

MODIFIED_ZWICKER_POWER = np.array(
    [0.25520097857560436] * 4 +
    [0.25168783742879913, 0.2480666573186961, 0.244767379124259,
     0.24173800119368227, 0.23893798876066405, 0.23633516221479894,
     0.23390360348392067, 0.23162209128929445] +
    [0.23] * 37, dtype=np.float32)

WIDTH_OF_BAND_BARK = np.array(
    [0.157344, 0.317994, 0.322441, 0.326934, 0.331474, 0.336061, 0.340697,
     0.345381, 0.350114, 0.354897, 0.359729, 0.364611, 0.369544, 0.374529,
     0.379565, 0.384653, 0.389794, 0.394989, 0.400236, 0.405538, 0.410894,
     0.416306, 0.421773, 0.427297, 0.432877, 0.438514, 0.444209, 0.449962,
     0.455774, 0.461645, 0.467577, 0.473569, 0.479621, 0.485736, 0.491912,
     0.498151, 0.504454, 0.510819, 0.51725, 0.523745, 0.530308, 0.536934,
     0.543629, 0.55039, 0.55722, 0.564119, 0.571085, 0.578125, 0.585232],
    dtype=np.float32)


# ------------------------------ host-side constants ----------------------------
def build_stft_weight():
    # ConvSTFT(512, 128, 512, 'hanning', 'complex'):
    # fourier_basis = rfft(eye(512))[:512]; real = cos, imag = -sin, x hann window.
    n = np.arange(WIN_LEN)
    k = np.arange(F)
    ang = 2.0 * np.pi * np.outer(n, k) / NBINS
    window = 0.5 - 0.5 * np.cos(2.0 * np.pi * n / WIN_LEN)
    kr = window[:, None] * np.cos(ang)
    ki = window[:, None] * (-np.sin(ang))
    w = np.zeros((WIN_LEN, 2 * FPAD), dtype=np.float32)   # [kr | ki], zero padded
    w[:, :F] = kr
    w[:, FPAD:FPAD + F] = ki
    return w


def build_bark_rhs():
    """(FPAD, 64) RHS: cols 0..48 bark matrix, col 49 = mask_sll (fused SLL sum)."""
    # TODO(synk): the real Bark_matrix_16k comes from bark_matrix_16k.mat; here we
    # build a deterministic one-hot bin->band aggregation of the same shape.
    band = (np.arange(F) * NBARK) // F
    rhs = np.zeros((FPAD, NB64), dtype=np.float32)          # rows >= F stay zero
    rhs[np.arange(F), band] = 1.0
    # SLL mask (pow_correc_factor for 'sqrt_hann' = 2.0, window_weight = 1.0).
    m = np.zeros(F, dtype=np.float32)
    m[11] = 0.5 * 25.0 / 31.25
    m[12:104] = 1.0
    m[104] = 0.5
    corr = 2.0 * 1.0 * (NBINS + 2.0) / (NBINS ** 2)
    rhs[:F, NBARK] = m * corr
    return rhs


def build_constants():
    """Packed (8,128) constants.

    Lane halves 0..63 / 64..127 hold duplicated per-band constants so the
    loudness / distortion stage runs on a lane-packed (T,128) [ref | deg] array.
    Lanes 49..63 / 113..127 (fsum column + padding) get sentinels (thr=1e30,
    0.5/thr=0, width=0) so they never pass a threshold and never contribute.
    """
    big = 1.0e30
    thr = ABS_THRESH_POWER
    c = np.zeros((8, 128), dtype=np.float32)
    c[0, :] = big
    c[0, :NBARK] = thr
    c[0, 64:64 + NBARK] = thr                                  # abs threshold
    c[1, :] = big
    c[1, :NBARK] = 100.0 * thr
    c[1, 64:64 + NBARK] = 100.0 * thr                          # 100 * threshold
    c[2, :NBARK] = 0.5 / thr
    c[2, 64:64 + NBARK] = 0.5 / thr                            # 0.5 / threshold
    aterm = SL * np.power(thr / 0.5, MODIFIED_ZWICKER_POWER)
    c[3, :NBARK] = aterm
    c[3, 64:64 + NBARK] = aterm                                # Sl * (thr/0.5)**zw
    c[4, :] = 0.23
    c[4, :NBARK] = MODIFIED_ZWICKER_POWER
    c[4, 64:64 + NBARK] = MODIFIED_ZWICKER_POWER               # zwicker power
    c[5, :NBARK] = WIDTH_OF_BAND_BARK                          # widths (ref lanes only)
    return c


def _pick_vmem_limit():
    # Generation-aware VMEM budget: ~3/4 of physical, capped at 96 MiB
    # (v5e/v6e: 128 MiB -> 96 MiB; v7x: 64 MiB -> 48 MiB); safe 32 MiB fallback.
    try:
        cap = int(pltpu.get_tpu_info().vmem_capacity_bytes)
    except Exception:
        cap = 0
    if cap >= 64 * 1024 * 1024:
        return min((cap * 3) // 4, 96 * 1024 * 1024)
    return 32 * 1024 * 1024


# ------------------------------- Pallas kernel --------------------------------
def pmsqe_kernel(est_ref, clean_ref, w_ref, bark_ref, cst_ref, out_ref, fr_ref,
                 *, T, T_pad, sqrt_total_width):
    cf = clean_ref[0]    # (T+3, 128) bf16 reference signal; row r = samples [128r, 128r+128)
    ef = est_ref[0]      # (T+3, 128) bf16 degraded signal

    # ---- in-kernel framing (bf16 scratch): frame t = rows t..t+3 -> 512 samples.
    # TODO(synk): on v5e consider 4 accumulated K=128 matmuls instead of the frame
    # scratch if the bundle dump shows the vst slot saturating on the fr writes.
    for j in range(4):
        col = j * HOP
        fr_ref[0:T, col:col + HOP] = cf[j:j + T, :]
        fr_ref[T_pad:T_pad + T, col:col + HOP] = ef[j:j + T, :]
    if T_pad != T:
        z = jnp.zeros((T_pad - T, WIN_LEN), dtype=fr_ref.dtype)
        fr_ref[T:T_pad, :] = z
        fr_ref[T_pad + T:, :] = z

    # ---- fused STFT: one bf16 MXU pass for {ref, deg} x {re, im}, f32 accumulation.
    frames = fr_ref[...]                                   # (2*T_pad, 512) bf16
    spec = jnp.dot(frames, w_ref[...], preferred_element_type=jnp.float32)  # (2T_pad, 768)
    re = spec[:, :FPAD]
    im = spec[:, FPAD:]
    p = re * re + im * im                                  # (2*T_pad, FPAD); lanes >= F are 0

    # ---- fused bark matmul; col NBARK carries the masked SLL frequency sum.
    bm = jnp.dot(p, bark_ref[...], preferred_element_type=jnp.float32)      # (2T_pad, 64)
    fsum = bm[:, NBARK:NBARK + 1]                          # (2*T_pad, 1) = sum_f p * mask_sll
    ref_sum = jnp.sum(fsum[:T_pad], axis=-2, keepdims=True)                 # (1, 1)
    deg_sum = jnp.sum(fsum[T_pad:], axis=-2, keepdims=True)
    # scale = Sp * 1e7 / mean_pow, mean_pow = (sum_t sum_f masked / F) / T (pad_mask == 1)
    corr = SP * 1.0e7 * float(F) * float(T)
    ref_b = bm[:T_pad] * (corr / (ref_sum + EPS))          # (T_pad, 64) ref bark spectra
    deg_b = bm[T_pad:] * (corr / (deg_sum + EPS))          # (T_pad, 64) deg bark spectra

    thr = cst_ref[0:1, 0:NB64]
    thr100 = cst_ref[1:2, 0:NB64]

    # ---- bark frequency equalization (lanes >= 49 never pass thr100 = 1e30).
    ap100 = jnp.sum(jnp.where(ref_b > thr100, ref_b, 0.0), axis=-1, keepdims=True)
    not_silent = ap100 >= 1.0e7                            # (T_pad, 1)
    cond_thr = ref_b >= thr100
    ref_thr = jnp.where(cond_thr, ref_b, 0.0)
    deg_thr = jnp.where(cond_thr, deg_b, 0.0)
    avg_ref = jnp.sum(jnp.where(not_silent, ref_thr, 0.0), axis=-2, keepdims=True)
    avg_deg = jnp.sum(jnp.where(not_silent, deg_thr, 0.0), axis=-2, keepdims=True)
    eq = (avg_ref + 1000.0) * pl.reciprocal(avg_deg + 1000.0, approx=True)
    eq = jnp.clip(eq, 0.01, 100.0)
    deg_b = eq * deg_b

    # ---- bark gain equalization (apr doubles as audible_power_ref for the weights).
    apr = jnp.sum(jnp.where(ref_b > thr, ref_b, 0.0), axis=-1, keepdims=True)
    apd = jnp.sum(jnp.where(deg_b > thr, deg_b, 0.0), axis=-1, keepdims=True)
    gain = (apr + 5000.0) * pl.reciprocal(apd + 5000.0, approx=True)
    gain = jnp.clip(gain, 0.0003, 5.0)
    deg_b = gain * deg_b

    # ---- lane-packed loudness / distortion stage: ref lanes 0..48, deg lanes 64..112.
    thr_p = cst_ref[0:1, :]
    hinv_p = cst_ref[2:3, :]
    slat_p = cst_ref[3:4, :]
    zw_p = cst_ref[4:5, :]
    width_p = cst_ref[5:6, :]                              # nonzero in lanes 0..48 only

    pk = jnp.concatenate([ref_b, deg_b], axis=-1)          # (T_pad, 128)
    pk_r = pltpu.roll(pk, shift=64, axis=1)                # lanes 0..48 now hold deg

    ld = jnp.where(pk < thr_p, 0.0,
                   slat_p * (jnp.exp(zw_p * jnp.log(0.5 + pk * hinv_p)) - 1.0))
    ld_r = pltpu.roll(ld, shift=64, axis=1)                # lanes 0..48: distorted loudness

    r = jnp.abs(ld_r - ld)
    mterm = 0.25 * jnp.minimum(ld, ld_r)
    sym_d = jnp.maximum(r - mterm, EPS)
    asym = jnp.exp(1.2 * jnp.log((pk_r + 50.0) / (pk + 50.0)))
    asym_factor = jnp.where(asym < 3.0, 0.0, jnp.minimum(asym, 12.0))
    asym_d = asym_factor * sym_d

    # ---- per-frame distortion (width_p masks everything but the 49 ref-half bands).
    sw = sym_d * width_p
    d_frame = jnp.sqrt(jnp.sum(sw * sw, axis=-1, keepdims=True)
                       + float(NBARK) * EPS) * sqrt_total_width
    da_frame = jnp.sum(asym_d * width_p, axis=-1, keepdims=True)
    inv_w = jnp.exp(-0.04 * jnp.log((apr + 1.0e5) * 1.0e-7))   # 1 / weights (exact)
    wd = jnp.minimum(d_frame * inv_w, 45.0)
    wda = jnp.minimum(da_frame * inv_w, 45.0)
    pmsqe_frame = ALPHA * wd + BETA * wda                  # (T_pad, 1); pad_mask == 1

    if T_pad != T:
        rowi = jax.lax.broadcasted_iota(jnp.int32, (T_pad, 1), 0)
        pmsqe_frame = jnp.where(rowi < T, pmsqe_frame, 0.0)
    out_ref[0] = jnp.sum(pmsqe_frame, axis=-2, keepdims=True) * (1.0 / float(T))


# --------------------------------- wrapper -------------------------------------
def pmsqe_loss(est_sig, clean_sig):
    """PMSQELoss(hop=128, log_mse=False).forward(est_sig, clean_sig)."""
    B, L = est_sig.shape
    pad = WIN_LEN - HOP                        # 384, matches F.pad inside ConvSTFT
    T = (L + 2 * pad - WIN_LEN) // HOP + 1
    T_pad = -(-T // 8) * 8                     # sublane-aligned ref/deg split
    rows = T + 3                               # frame t spans rows t..t+3
    need = rows * HOP                          # always <= L + 2*pad

    def prep(sig):
        sp = jnp.pad(sig.astype(jnp.float32), ((0, 0), (pad, pad)))
        return sp[:, :need].reshape(B, rows, HOP).astype(jnp.bfloat16)

    est_m = prep(est_sig)
    clean_m = prep(clean_sig)

    w = jnp.asarray(build_stft_weight(), dtype=jnp.bfloat16)   # bf16 MXU path
    bark = jnp.asarray(build_bark_rhs())
    consts = jnp.asarray(build_constants())
    sqrt_total_width = float(np.sqrt(np.sum(WIDTH_OF_BAND_BARK)))

    kernel = functools.partial(pmsqe_kernel, T=T, T_pad=T_pad,
                               sqrt_total_width=sqrt_total_width)

    # TODO(synk): for very long signals (T in the thousands) add a T-tile grid axis
    # (accumulate-then-finalize: pass 1 accumulates the SLL sums + raw bark tiles,
    # pass 2 applies eq/gain + distortion) so the working set fits v7x's 64 MiB VMEM
    # and the extra parallel axis keeps both v7x TensorCores busy when B is 1/odd.
    # TODO(synk): single-buffer the constant operands (pipeline_mode=pl.Buffered(1))
    # once the target JAX version is confirmed to accept it; marginal VMEM win here.
    out = pl.pallas_call(
        kernel,
        out_shape=jax.ShapeDtypeStruct((B, 1, 1), jnp.float32),
        grid=(B,),
        in_specs=[
            pl.BlockSpec((1, rows, HOP), lambda b: (b, 0, 0)),      # degraded signal
            pl.BlockSpec((1, rows, HOP), lambda b: (b, 0, 0)),      # reference signal
            pl.BlockSpec((WIN_LEN, 2 * FPAD), lambda b: (0, 0)),    # [kr | ki] bf16
            pl.BlockSpec((FPAD, NB64), lambda b: (0, 0)),           # bark + mask_sll col
            pl.BlockSpec((8, 128), lambda b: (0, 0)),               # packed bark constants
        ],
        out_specs=pl.BlockSpec((1, 1, 1), lambda b: (b, 0, 0)),
        scratch_shapes=[pltpu.VMEM((2 * T_pad, WIN_LEN), jnp.bfloat16)],  # frame matrix
        compiler_params=pltpu.CompilerParams(
            dimension_semantics=("parallel",),
            vmem_limit_bytes=_pick_vmem_limit()),
    )(est_m, clean_m, w, bark, consts)

    # pad_mask is all ones -> per-batch mean over T already done in-kernel.
    # log_mse=False in PMSQELoss default -> MSE term is 0.
    return jnp.mean(out[:, 0, 0])


if __name__ == "__main__":
    key = jax.random.PRNGKey(0)
    k1, k2 = jax.random.split(key)
    B, L = 2, 640                              # -> T = 8 frames of 512 @ hop 128
    est_sig = jax.random.normal(k1, (B, L), dtype=jnp.float32)
    clean_sig = jax.random.normal(k2, (B, L), dtype=jnp.float32)

    loss = jax.jit(pmsqe_loss)(est_sig, clean_sig)
    loss = jax.block_until_ready(loss)
    assert np.isfinite(np.asarray(loss)).all()
    print("KERNEL_OK")
</pallas_src>

<mosaic_0001>
module attributes {stable_mosaic.version = 11 : i64} {
  func.func @pmsqe_kernel(%arg0: i32, %arg1: memref<1x11x128xbf16, #tpu.memory_space<vmem>>, %arg2: memref<1x11x128xbf16, #tpu.memory_space<vmem>>, %arg3: memref<512x768xbf16, #tpu.memory_space<vmem>>, %arg4: memref<384x64xf32, #tpu.memory_space<vmem>>, %arg5: memref<8x128xf32, #tpu.memory_space<vmem>>, %arg6: memref<1x1x1xf32, #tpu.memory_space<vmem>>, %arg7: memref<16x512xbf16, #tpu.memory_space<vmem>>) attributes {dimension_semantics = [#tpu.dimension_semantics<parallel>], iteration_bounds = array<i64: 2>, scalar_prefetch = 0 : i64, scratch_operands = 1 : i64, tpu.core_type = #tpu.core_type<tc>, window_params = [{transform_indices = @transform_0, window_bounds = array<i64: 1, 11, 128>}, {transform_indices = @transform_1, window_bounds = array<i64: 1, 11, 128>}, {pipeline_mode = #tpu.pipeline_mode<synchronous>, transform_indices = @transform_2, window_bounds = array<i64: 512, 768>}, {pipeline_mode = #tpu.pipeline_mode<synchronous>, transform_indices = @transform_3, window_bounds = array<i64: 384, 64>}, {pipeline_mode = #tpu.pipeline_mode<synchronous>, transform_indices = @transform_4, window_bounds = array<i64: 8, 128>}, {transform_indices = @transform_5, window_bounds = array<i64: 1, 1, 1>}]} {
    %c0 = arith.constant 0 : index
    %c0_0 = arith.constant 0 : index
    %c0_1 = arith.constant 0 : index
    %0 = vector.load %arg2[%c0, %c0_0, %c0_1] : memref<1x11x128xbf16, #tpu.memory_space<vmem>>, vector<1x11x128xbf16>
    %1 = vector.shape_cast %0 : vector<1x11x128xbf16> to vector<11x128xbf16>
    %c0_2 = arith.constant 0 : index
    %c0_3 = arith.constant 0 : index
    %c0_4 = arith.constant 0 : index
    %2 = vector.load %arg1[%c0_2, %c0_3, %c0_4] : memref<1x11x128xbf16, #tpu.memory_space<vmem>>, vector<1x11x128xbf16>
    %3 = vector.shape_cast %2 : vector<1x11x128xbf16> to vector<11x128xbf16>
    %4 = vector.extract_strided_slice %1 {offsets = [0, 0], sizes = [8, 128], strides = [1, 1]} : vector<11x128xbf16> to vector<8x128xbf16>
    %c0_5 = arith.constant 0 : index
    %c0_6 = arith.constant 0 : index
    %5 = vector.load %arg7[%c0_5, %c0_6] : memref<16x512xbf16, #tpu.memory_space<vmem>>, vector<8x128xbf16>
    tpu.vector_store %arg7[%c0_5, %c0_6], %4 {strides = array<i32>} : memref<16x512xbf16, #tpu.memory_space<vmem>>, vector<8x128xbf16>,
    %6 = vector.extract_strided_slice %3 {offsets = [0, 0], sizes = [8, 128], strides = [1, 1]} : vector<11x128xbf16> to vector<8x128xbf16>
    %c8 = arith.constant 8 : index
    %c0_7 = arith.constant 0 : index
    %7 = vector.load %arg7[%c8, %c0_7] : memref<16x512xbf16, #tpu.memory_space<vmem>>, vector<8x128xbf16>
    tpu.vector_store %arg7[%c8, %c0_7], %6 {strides = array<i32>} : memref<16x512xbf16, #tpu.memory_space<vmem>>, vector<8x128xbf16>,
    %8 = vector.extract_strided_slice %1 {offsets = [1, 0], sizes = [8, 128], strides = [1, 1]} : vector<11x128xbf16> to vector<8x128xbf16>
    %c0_8 = arith.constant 0 : index
    %c128 = arith.constant 128 : index
    %9 = vector.load %arg7[%c0_8, %c128] : memref<16x512xbf16, #tpu.memory_space<vmem>>, vector<8x128xbf16>
    tpu.vector_store %arg7[%c0_8, %c128], %8 {strides = array<i32>} : memref<16x512xbf16, #tpu.memory_space<vmem>>, vector<8x128xbf16>,
    %10 = vector.extract_strided_slice %3 {offsets = [1, 0], sizes = [8, 128], strides = [1, 1]} : vector<11x128xbf16> to vector<8x128xbf16>
    %c8_9 = arith.constant 8 : index
    %c128_10 = arith.constant 128 : index
    %11 = vector.load %arg7[%c8_9, %c128_10] : memref<16x512xbf16, #tpu.memory_space<vmem>>, vector<8x128xbf16>
    tpu.vector_store %arg7[%c8_9, %c128_10], %10 {strides = array<i32>} : memref<16x512xbf16, #tpu.memory_space<vmem>>, vector<8x128xbf16>,
    %12 = vector.extract_strided_slice %1 {offsets = [2, 0], sizes = [8, 128], strides = [1, 1]} : vector<11x128xbf16> to vector<8x128xbf16>
    %c0_11 = arith.constant 0 : index
    %c256 = arith.constant 256 : index
    %13 = vector.load %arg7[%c0_11, %c256] : memref<16x512xbf16, #tpu.memory_space<vmem>>, vector<8x128xbf16>
    tpu.vector_store %arg7[%c0_11, %c256], %12 {strides = array<i32>} : memref<16x512xbf16, #tpu.memory_space<vmem>>, vector<8x128xbf16>,
    %14 = vector.extract_strided_slice %3 {offsets = [2, 0], sizes = [8, 128], strides = [1, 1]} : vector<11x128xbf16> to vector<8x128xbf16>
    %c8_12 = arith.constant 8 : index
    %c256_13 = arith.constant 256 : index
    %15 = vector.load %arg7[%c8_12, %c256_13] : memref<16x512xbf16, #tpu.memory_space<vmem>>, vector<8x128xbf16>
    tpu.vector_store %arg7[%c8_12, %c256_13], %14 {strides = array<i32>} : memref<16x512xbf16, #tpu.memory_space<vmem>>, vector<8x128xbf16>,
    %16 = vector.extract_strided_slice %1 {offsets = [3, 0], sizes = [8, 128], strides = [1, 1]} : vector<11x128xbf16> to vector<8x128xbf16>
    %c0_14 = arith.constant 0 : index
    %c384 = arith.constant 384 : index
    %17 = vector.load %arg7[%c0_14, %c384] : memref<16x512xbf16, #tpu.memory_space<vmem>>, vector<8x128xbf16>
    tpu.vector_store %arg7[%c0_14, %c384], %16 {strides = array<i32>} : memref<16x512xbf16, #tpu.memory_space<vmem>>, vector<8x128xbf16>,
    %18 = vector.extract_strided_slice %3 {offsets = [3, 0], sizes = [8, 128], strides = [1, 1]} : vector<11x128xbf16> to vector<8x128xbf16>
    %c8_15 = arith.constant 8 : index
    %c384_16 = arith.constant 384 : index
    %19 = vector.load %arg7[%c8_15, %c384_16] : memref<16x512xbf16, #tpu.memory_space<vmem>>, vector<8x128xbf16>
    tpu.vector_store %arg7[%c8_15, %c384_16], %18 {strides = array<i32>} : memref<16x512xbf16, #tpu.memory_space<vmem>>, vector<8x128xbf16>,
    %c0_17 = arith.constant 0 : index
    %c0_18 = arith.constant 0 : index
    %20 = vector.load %arg7[%c0_17, %c0_18] : memref<16x512xbf16, #tpu.memory_space<vmem>>, vector<16x512xbf16>
    %c0_19 = arith.constant 0 : index
    %c0_20 = arith.constant 0 : index
    %21 = vector.load %arg3[%c0_19, %c0_20] : memref<512x768xbf16, #tpu.memory_space<vmem>>, vector<512x768xbf16>
    %cst = arith.constant dense<0.000000e+00> : vector<16x768xf32>
    %22 = tpu.matmul %20, %21, %cst {dimension_numbers = #tpu.dot_dimension_numbers<[1], [0], [0], [1], [0, 0, 1, 1], [], []>} : vector<16x512xbf16>, vector<512x768xbf16>, vector<16x768xf32> -> vector<16x768xf32>
    %23 = vector.extract_strided_slice %22 {offsets = [0, 0], sizes = [16, 384], strides = [1, 1]} : vector<16x768xf32> to vector<16x384xf32>
    %24 = vector.extract_strided_slice %22 {offsets = [0, 384], sizes = [16, 384], strides = [1, 1]} : vector<16x768xf32> to vector<16x384xf32>
    %25 = arith.mulf %23, %23 : vector<16x384xf32>
    %26 = arith.mulf %24, %24 : vector<16x384xf32>
    %27 = arith.addf %25, %26 : vector<16x384xf32>
    %c0_21 = arith.constant 0 : index
    %c0_22 = arith.constant 0 : index
    %28 = vector.load %arg4[%c0_21, %c0_22] : memref<384x64xf32, #tpu.memory_space<vmem>>, vector<384x64xf32>
    %cst_23 = arith.constant dense<0.000000e+00> : vector<16x64xf32>
    %29 = tpu.matmul %27, %28, %cst_23 {dimension_numbers = #tpu.dot_dimension_numbers<[1], [0], [0], [1], [0, 0, 1, 1], [], []>} : vector<16x384xf32>, vector<384x64xf32>, vector<16x64xf32> -> vector<16x64xf32>
    %30 = vector.extract_strided_slice %29 {offsets = [0, 49], sizes = [16, 1], strides = [1, 1]} : vector<16x64xf32> to vector<16x1xf32>
    %31 = vector.extract_strided_slice %30 {offsets = [0, 0], sizes = [8, 1], strides = [1, 1]} : vector<16x1xf32> to vector<8x1xf32>
    %cst_24 = arith.constant dense<0.000000e+00> : vector<1xf32>
    %32 = vector.multi_reduction <add>, %31, %cst_24 [0] : vector<8x1xf32> to vector<1xf32>
    %33 = vector.shape_cast %32 : vector<1xf32> to vector<1x1xf32>
    %34 = vector.extract_strided_slice %30 {offsets = [8, 0], sizes = [8, 1], strides = [1, 1]} : vector<16x1xf32> to vector<8x1xf32>
    %cst_25 = arith.constant dense<0.000000e+00> : vector<1xf32>
    %35 = vector.multi_reduction <add>, %34, %cst_25 [0] : vector<8x1xf32> to vector<1xf32>
    %36 = vector.shape_cast %35 : vector<1xf32> to vector<1x1xf32>
    %37 = vector.extract_strided_slice %29 {offsets = [0, 0], sizes = [8, 64], strides = [1, 1]} : vector<16x64xf32> to vector<8x64xf32>
    %cst_26 = arith.constant 9.99999993E-9 : f32
    %38 = vector.broadcast %cst_26 : f32 to vector<1x1xf32>
    %39 = arith.addf %33, %38 : vector<1x1xf32>
    %cst_27 = arith.constant 142087.141 : f32
    %40 = vector.broadcast %cst_27 : f32 to vector<1x1xf32>
    %41 = arith.divf %40, %39 : vector<1x1xf32>
    %42 = vector.broadcast %41 : vector<1x1xf32> to vector<8x64xf32>
    %43 = arith.mulf %37, %42 : vector<8x64xf32>
    %44 = vector.extract_strided_slice %29 {offsets = [8, 0], sizes = [8, 64], strides = [1, 1]} : vector<16x64xf32> to vector<8x64xf32>
    %cst_28 = arith.constant 9.99999993E-9 : f32
    %45 = vector.broadcast %cst_28 : f32 to vector<1x1xf32>
    %46 = arith.addf %36, %45 : vector<1x1xf32>
    %cst_29 = arith.constant 142087.141 : f32
    %47 = vector.broadcast %cst_29 : f32 to vector<1x1xf32>
    %48 = arith.divf %47, %46 : vector<1x1xf32>
    %49 = vector.broadcast %48 : vector<1x1xf32> to vector<8x64xf32>
    %50 = arith.mulf %44, %49 : vector<8x64xf32>
    %c0_30 = arith.constant 0 : index
    %c0_31 = arith.constant 0 : index
    %51 = vector.load %arg5[%c0_30, %c0_31] : memref<8x128xf32, #tpu.memory_space<vmem>>, vector<1x64xf32>
    %c1 = arith.constant 1 : index
    %c0_32 = arith.constant 0 : index
    %52 = vector.load %arg5[%c1, %c0_32] : memref<8x128xf32, #tpu.memory_space<vmem>>, vector<1x64xf32>
    %53 = vector.broadcast %52 : vector<1x64xf32> to vector<8x64xf32>
    %54 = arith.cmpf ogt, %43, %53 : vector<8x64xf32>
    %cst_33 = arith.constant 0.000000e+00 : f32
    %55 = vector.broadcast %cst_33 : f32 to vector<8x64xf32>
    %56 = arith.select %54, %43, %55 : vector<8x64xi1>, vector<8x64xf32>
    %cst_34 = arith.constant dense<0.000000e+00> : vector<8xf32>
    %57 = vector.multi_reduction <add>, %56, %cst_34 [1] : vector<8x64xf32> to vector<8xf32>
    %58 = vector.shape_cast %57 : vector<8xf32> to vector<8x1xf32>
    %cst_35 = arith.constant 1.000000e+07 : f32
    %59 = vector.broadcast %cst_35 : f32 to vector<8x1xf32>
    %60 = arith.cmpf oge, %58, %59 : vector<8x1xf32>
    %61 = vector.broadcast %52 : vector<1x64xf32> to vector<8x64xf32>
    %62 = arith.cmpf oge, %43, %61 : vector<8x64xf32>
    %cst_36 = arith.constant 0.000000e+00 : f32
    %63 = vector.broadcast %cst_36 : f32 to vector<8x64xf32>
    %64 = arith.select %62, %43, %63 : vector<8x64xi1>, vector<8x64xf32>
    %cst_37 = arith.constant 0.000000e+00 : f32
    %65 = vector.broadcast %cst_37 : f32 to vector<8x64xf32>
    %66 = arith.select %62, %50, %65 : vector<8x64xi1>, vector<8x64xf32>
    %cst_38 = arith.constant 0.000000e+00 : f32
    %67 = vector.shape_cast %60 : vector<8x1xi1> to vector<8x1xi1>
    %68 = vector.broadcast %67 : vector<8x1xi1> to vector<8x64xi1>
    %69 = vector.broadcast %cst_38 : f32 to vector<8x64xf32>
    %70 = arith.select %68, %64, %69 : vector<8x64xi1>, vector<8x64xf32>
    %cst_39 = arith.constant dense<0.000000e+00> : vector<64xf32>
    %71 = vector.multi_reduction <add>, %70, %cst_39 [0] : vector<8x64xf32> to vector<64xf32>
    %72 = vector.shape_cast %71 : vector<64xf32> to vector<1x64xf32>
    %cst_40 = arith.constant 0.000000e+00 : f32
    %73 = vector.shape_cast %60 : vector<8x1xi1> to vector<8x1xi1>
    %74 = vector.broadcast %73 : vector<8x1xi1> to vector<8x64xi1>
    %75 = vector.broadcast %cst_40 : f32 to vector<8x64xf32>
    %76 = arith.select %74, %66, %75 : vector<8x64xi1>, vector<8x64xf32>
    %cst_41 = arith.constant dense<0.000000e+00> : vector<64xf32>
    %77 = vector.multi_reduction <add>, %76, %cst_41 [0] : vector<8x64xf32> to vector<64xf32>
    %78 = vector.shape_cast %77 : vector<64xf32> to vector<1x64xf32>
    %cst_42 = arith.constant 1.000000e+03 : f32
    %79 = vector.broadcast %cst_42 : f32 to vector<1x64xf32>
    %80 = arith.addf %72, %79 : vector<1x64xf32>
    %cst_43 = arith.constant 1.000000e+03 : f32
    %81 = vector.broadcast %cst_43 : f32 to vector<1x64xf32>
    %82 = arith.addf %78, %81 : vector<1x64xf32>
    %83 = tpu.reciprocal %82 {approx = true} : vector<1x64xf32> -> vector<1x64xf32>
    %84 = arith.mulf %80, %83 : vector<1x64xf32>
    %cst_44 = arith.constant 0.00999999977 : f32
    %cst_45 = arith.constant 1.000000e+02 : f32
    %85 = vector.broadcast %cst_44 : f32 to vector<1x64xf32>
    %86 = arith.maximumf %85, %84 : vector<1x64xf32>
    %87 = vector.broadcast %cst_45 : f32 to vector<1x64xf32>
    %88 = arith.minimumf %87, %86 : vector<1x64xf32>
    %89 = vector.broadcast %88 : vector<1x64xf32> to vector<8x64xf32>
    %90 = arith.mulf %89, %50 : vector<8x64xf32>
    %91 = vector.broadcast %51 : vector<1x64xf32> to vector<8x64xf32>
    %92 = arith.cmpf ogt, %43, %91 : vector<8x64xf32>
    %cst_46 = arith.constant 0.000000e+00 : f32
    %93 = vector.broadcast %cst_46 : f32 to vector<8x64xf32>
    %94 = arith.select %92, %43, %93 : vector<8x64xi1>, vector<8x64xf32>
    %cst_47 = arith.constant dense<0.000000e+00> : vector<8xf32>
    %95 = vector.multi_reduction <add>, %94, %cst_47 [1] : vector<8x64xf32> to vector<8xf32>
    %96 = vector.shape_cast %95 : vector<8xf32> to vector<8x1xf32>
    %97 = vector.broadcast %51 : vector<1x64xf32> to vector<8x64xf32>
    %98 = arith.cmpf ogt, %90, %97 : vector<8x64xf32>
    %cst_48 = arith.constant 0.000000e+00 : f32
    %99 = vector.broadcast %cst_48 : f32 to vector<8x64xf32>
    %100 = arith.select %98, %90, %99 : vector<8x64xi1>, vector<8x64xf32>
    %cst_49 = arith.constant dense<0.000000e+00> : vector<8xf32>
    %101 = vector.multi_reduction <add>, %100, %cst_49 [1] : vector<8x64xf32> to vector<8xf32>
    %102 = vector.shape_cast %101 : vector<8xf32> to vector<8x1xf32>
    %cst_50 = arith.constant 5.000000e+03 : f32
    %103 = vector.broadcast %cst_50 : f32 to vector<8x1xf32>
    %104 = arith.addf %96, %103 : vector<8x1xf32>
    %cst_51 = arith.constant 5.000000e+03 : f32
    %105 = vector.broadcast %cst_51 : f32 to vector<8x1xf32>
    %106 = arith.addf %102, %105 : vector<8x1xf32>
    %107 = tpu.reciprocal %106 {approx = true} : vector<8x1xf32> -> vector<8x1xf32>
    %108 = arith.mulf %104, %107 : vector<8x1xf32>
    %cst_52 = arith.constant 3.000000e-04 : f32
    %cst_53 = arith.constant 5.000000e+00 : f32
    %109 = vector.broadcast %cst_52 : f32 to vector<8x1xf32>
    %110 = arith.maximumf %109, %108 : vector<8x1xf32>
    %111 = vector.broadcast %cst_53 : f32 to vector<8x1xf32>
    %112 = arith.minimumf %111, %110 : vector<8x1xf32>
    %113 = vector.broadcast %112 : vector<8x1xf32> to vector<8x64xf32>
    %114 = arith.mulf %113, %90 : vector<8x64xf32>
    %c0_54 = arith.constant 0 : index
    %c0_55 = arith.constant 0 : index
    %115 = vector.load %arg5[%c0_54, %c0_55] : memref<8x128xf32, #tpu.memory_space<vmem>>, vector<1x128xf32>
    %c2 = arith.constant 2 : index
    %c0_56 = arith.constant 0 : index
    %116 = vector.load %arg5[%c2, %c0_56] : memref<8x128xf32, #tpu.memory_space<vmem>>, vector<1x128xf32>
    %c3 = arith.constant 3 : index
    %c0_57 = arith.constant 0 : index
    %117 = vector.load %arg5[%c3, %c0_57] : memref<8x128xf32, #tpu.memory_space<vmem>>, vector<1x128xf32>
    %c4 = arith.constant 4 : index
    %c0_58 = arith.constant 0 : index
    %118 = vector.load %arg5[%c4, %c0_58] : memref<8x128xf32, #tpu.memory_space<vmem>>, vector<1x128xf32>
    %c5 = arith.constant 5 : index
    %c0_59 = arith.constant 0 : index
    %119 = vector.load %arg5[%c5, %c0_59] : memref<8x128xf32, #tpu.memory_space<vmem>>, vector<1x128xf32>
    %120 = tpu.concatenate %43, %114 in 1 : vector<8x64xf32>, vector<8x64xf32> -> vector<8x128xf32>
    %c64_i32 = arith.constant 64 : i32
    %121 = tpu.dynamic_rotate %120 by %c64_i32 dim 1 : vector<8x128xf32>, i32 -> vector<8x128xf32>
    %122 = vector.broadcast %115 : vector<1x128xf32> to vector<8x128xf32>
    %123 = arith.cmpf olt, %120, %122 : vector<8x128xf32>
    %124 = vector.broadcast %116 : vector<1x128xf32> to vector<8x128xf32>
    %125 = arith.mulf %120, %124 : vector<8x128xf32>
    %cst_60 = arith.constant 5.000000e-01 : f32
    %126 = vector.broadcast %cst_60 : f32 to vector<8x128xf32>
    %127 = arith.addf %126, %125 : vector<8x128xf32>
    %128 = math.log %127 : vector<8x128xf32>
    %129 = vector.broadcast %118 : vector<1x128xf32> to vector<8x128xf32>
    %130 = arith.mulf %129, %128 : vector<8x128xf32>
    %131 = math.exp %130 : vector<8x128xf32>
    %cst_61 = arith.constant 1.000000e+00 : f32
    %132 = vector.broadcast %cst_61 : f32 to vector<8x128xf32>
    %133 = arith.subf %131, %132 : vector<8x128xf32>
    %134 = vector.broadcast %117 : vector<1x128xf32> to vector<8x128xf32>
    %135 = arith.mulf %134, %133 : vector<8x128xf32>
    %cst_62 = arith.constant 0.000000e+00 : f32
    %136 = vector.broadcast %cst_62 : f32 to vector<8x128xf32>
    %137 = arith.select %123, %136, %135 : vector<8x128xi1>, vector<8x128xf32>
    %c64_i32_63 = arith.constant 64 : i32
    %138 = tpu.dynamic_rotate %137 by %c64_i32_63 dim 1 : vector<8x128xf32>, i32 -> vector<8x128xf32>
    %139 = arith.subf %138, %137 : vector<8x128xf32>
    %140 = math.absf %139 : vector<8x128xf32>
    %141 = arith.minimumf %137, %138 : vector<8x128xf32>
    %cst_64 = arith.constant 2.500000e-01 : f32
    %142 = vector.broadcast %cst_64 : f32 to vector<8x128xf32>
    %143 = arith.mulf %142, %141 : vector<8x128xf32>
    %144 = arith.subf %140, %143 : vector<8x128xf32>
    %cst_65 = arith.constant 9.99999993E-9 : f32
    %145 = vector.broadcast %cst_65 : f32 to vector<8x128xf32>
    %146 = arith.maximumf %144, %145 : vector<8x128xf32>
    %cst_66 = arith.constant 5.000000e+01 : f32
    %147 = vector.broadcast %cst_66 : f32 to vector<8x128xf32>
    %148 = arith.addf %121, %147 : vector<8x128xf32>
    %cst_67 = arith.constant 5.000000e+01 : f32
    %149 = vector.broadcast %cst_67 : f32 to vector<8x128xf32>
    %150 = arith.addf %120, %149 : vector<8x128xf32>
    %151 = arith.divf %148, %150 : vector<8x128xf32>
    %152 = math.log %151 : vector<8x128xf32>
    %cst_68 = arith.constant 1.200000e+00 : f32
    %153 = vector.broadcast %cst_68 : f32 to vector<8x128xf32>
    %154 = arith.mulf %153, %152 : vector<8x128xf32>
    %155 = math.exp %154 : vector<8x128xf32>
    %cst_69 = arith.constant 3.000000e+00 : f32
    %156 = vector.broadcast %cst_69 : f32 to vector<8x128xf32>
    %157 = arith.cmpf olt, %155, %156 : vector<8x128xf32>
    %cst_70 = arith.constant 1.200000e+01 : f32
    %158 = vector.broadcast %cst_70 : f32 to vector<8x128xf32>
    %159 = arith.minimumf %155, %158 : vector<8x128xf32>
    %cst_71 = arith.constant 0.000000e+00 : f32
    %160 = vector.broadcast %cst_71 : f32 to vector<8x128xf32>
    %161 = arith.select %157, %160, %159 : vector<8x128xi1>, vector<8x128xf32>
    %162 = arith.mulf %161, %146 : vector<8x128xf32>
    %163 = vector.broadcast %119 : vector<1x128xf32> to vector<8x128xf32>
    %164 = arith.mulf %146, %163 : vector<8x128xf32>
    %165 = arith.mulf %164, %164 : vector<8x128xf32>
    %cst_72 = arith.constant dense<0.000000e+00> : vector<8xf32>
    %166 = vector.multi_reduction <add>, %165, %cst_72 [1] : vector<8x128xf32> to vector<8xf32>
    %167 = vector.shape_cast %166 : vector<8xf32> to vector<8x1xf32>
    %cst_73 = arith.constant 4.900000e-07 : f32
    %168 = vector.broadcast %cst_73 : f32 to vector<8x1xf32>
    %169 = arith.addf %167, %168 : vector<8x1xf32>
    %170 = math.sqrt %169 : vector<8x1xf32>
    %cst_74 = arith.constant 4.61905289 : f32
    %171 = vector.broadcast %cst_74 : f32 to vector<8x1xf32>
    %172 = arith.mulf %170, %171 : vector<8x1xf32>
    %173 = vector.broadcast %119 : vector<1x128xf32> to vector<8x128xf32>
    %174 = arith.mulf %162, %173 : vector<8x128xf32>
    %cst_75 = arith.constant dense<0.000000e+00> : vector<8xf32>
    %175 = vector.multi_reduction <add>, %174, %cst_75 [1] : vector<8x128xf32> to vector<8xf32>
    %176 = vector.shape_cast %175 : vector<8xf32> to vector<8x1xf32>
    %cst_76 = arith.constant 1.000000e+05 : f32
    %177 = vector.broadcast %cst_76 : f32 to vector<8x1xf32>
    %178 = arith.addf %96, %177 : vector<8x1xf32>
    %cst_77 = arith.constant 1.000000e-07 : f32
    %179 = vector.broadcast %cst_77 : f32 to vector<8x1xf32>
    %180 = arith.mulf %178, %179 : vector<8x1xf32>
    %181 = math.log %180 : vector<8x1xf32>
    %cst_78 = arith.constant -4.000000e-02 : f32
    %182 = vector.broadcast %cst_78 : f32 to vector<8x1xf32>
    %183 = arith.mulf %182, %181 : vector<8x1xf32>
    %184 = math.exp %183 : vector<8x1xf32>
    %185 = arith.mulf %172, %184 : vector<8x1xf32>
    %cst_79 = arith.constant 4.500000e+01 : f32
    %186 = vector.broadcast %cst_79 : f32 to vector<8x1xf32>
    %187 = arith.minimumf %185, %186 : vector<8x1xf32>
    %188 = arith.mulf %176, %184 : vector<8x1xf32>
    %cst_80 = arith.constant 4.500000e+01 : f32
    %189 = vector.broadcast %cst_80 : f32 to vector<8x1xf32>
    %190 = arith.minimumf %188, %189 : vector<8x1xf32>
    %cst_81 = arith.constant 1.000000e-01 : f32
    %191 = vector.broadcast %cst_81 : f32 to vector<8x1xf32>
    %192 = arith.mulf %191, %187 : vector<8x1xf32>
    %cst_82 = arith.constant 3.090000e-02 : f32
    %193 = vector.broadcast %cst_82 : f32 to vector<8x1xf32>
    %194 = arith.mulf %193, %190 : vector<8x1xf32>
    %195 = arith.addf %192, %194 : vector<8x1xf32>
    %cst_83 = arith.constant dense<0.000000e+00> : vector<1xf32>
    %196 = vector.multi_reduction <add>, %195, %cst_83 [0] : vector<8x1xf32> to vector<1xf32>
    %197 = vector.shape_cast %196 : vector<1xf32> to vector<1x1xf32>
    %cst_84 = arith.constant 1.250000e-01 : f32
    %198 = vector.broadcast %cst_84 : f32 to vector<1x1xf32>
    %199 = arith.mulf %197, %198 : vector<1x1xf32>
    %c0_85 = arith.constant 0 : index
    %c0_86 = arith.constant 0 : index
    %c0_87 = arith.constant 0 : index
    %200 = vector.load %arg6[%c0_85, %c0_86, %c0_87] : memref<1x1x1xf32, #tpu.memory_space<vmem>>, vector<1x1x1xf32>
    %201 = vector.shape_cast %200 : vector<1x1x1xf32> to vector<1x1xf32>
    %202 = vector.shape_cast %199 : vector<1x1xf32> to vector<1x1x1xf32>
    tpu.vector_store %arg6[%c0_85, %c0_86, %c0_87], %202 {strides = array<i32>} : memref<1x1x1xf32, #tpu.memory_space<vmem>>, vector<1x1x1xf32>,
    return
  }
  func.func @transform_0(%arg0: i32) -> (i32, i32, i32) {
    %c0_i32 = arith.constant 0 : i32
    %c0_i32_0 = arith.constant 0 : i32
    %c0_i32_1 = arith.constant 0 : i32
    return %arg0, %c0_i32, %c0_i32_0 : i32, i32, i32
  }
  func.func @transform_1(%arg0: i32) -> (i32, i32, i32) {
    %c0_i32 = arith.constant 0 : i32
    %c0_i32_0 = arith.constant 0 : i32
    %c0_i32_1 = arith.constant 0 : i32
    return %arg0, %c0_i32, %c0_i32_0 : i32, i32, i32
  }
  func.func @transform_2(%arg0: i32) -> (i32, i32) {
    %c0_i32 = arith.constant 0 : i32
    %c0_i32_0 = arith.constant 0 : i32
    %c0_i32_1 = arith.constant 0 : i32
    return %c0_i32, %c0_i32_0 : i32, i32
  }
  func.func @transform_3(%arg0: i32) -> (i32, i32) {
    %c0_i32 = arith.constant 0 : i32
    %c0_i32_0 = arith.constant 0 : i32
    %c0_i32_1 = arith.constant 0 : i32
    return %c0_i32, %c0_i32_0 : i32, i32
  }
  func.func @transform_4(%arg0: i32) -> (i32, i32) {
    %c0_i32 = arith.constant 0 : i32
    %c0_i32_0 = arith.constant 0 : i32
    %c0_i32_1 = arith.constant 0 : i32
    return %c0_i32, %c0_i32_0 : i32, i32
  }
  func.func @transform_5(%arg0: i32) -> (i32, i32, i32) {
    %c0_i32 = arith.constant 0 : i32
    %c0_i32_0 = arith.constant 0 : i32
    %c0_i32_1 = arith.constant 0 : i32
    return %arg0, %c0_i32, %c0_i32_0 : i32, i32, i32
  }
}

</mosaic_0001>

<bundles_post_ra>
// kernel: pmsqe_loss.1
= control target key start
LH: loop header
LB: loop body
LE: loop exit
PB: predicated region body
PF: predicated region fallthrough
CT: control target
= control target key end

     0   :  { %s2925_s18 = smov 0   ;;  %s3717_s0 = inlined_call_operand.vmem [shape: bf16[2,11,128], index: 0, kind: input, shape index: {}]   ;;  %s3718_s1 = inlined_call_operand.vmem [shape: bf16[2,11,128], index: 1, kind: input, shape index: {}]   ;;  %s3719_s2 = inlined_call_operand.vmem [shape: bf16[512,768], index: 2, kind: input, shape index: {}]   ;;  %s3720_s3 = inlined_call_operand.vmem [shape: f32[384,64], index: 3, kind: input, shape index: {}]   ;;  %s3721_s4 = inlined_call_operand.vmem [shape: f32[8,128], index: 4, kind: input, shape index: {}]   ;;  %s3722_s5 = inlined_call_operand.vmem [shape: f32[2,1,1], index: 5, kind: output, shape index: {}]  }
   0x1 LB: > { %s2176_s19 = sadd.s32 4294967295, %s2891_s18   ;;  %p2180_p0 = scmp.ge.s32.totalorder %s2891_s18, 1  ;;  %s2891_s18 = sphi %s2925_s18, %s15_s18  }
   0x2   : > { %p197_p1 = scmp.lt.s32.totalorder %s2891_s18, 3 }
   0x4   : > { %p198_p2 = pnand %p2180_p0, %p197_p1 }
   0x5   : > { %v2570_v0 = vld [vmem:[%s3719_s2 + $0x4] ss:$24 sps:$4 sm:$0xff] (!%p198_p2)   ;;  %v2574_v2 = vld [vmem:[%s3719_s2] ss:$24 sps:$4 sm:$0xff] (!%p198_p2)   ;;  %v2576_v4 = vld [vmem:[%s3719_s2 + $0x34] ss:$24 sps:$4 sm:$0xff] (!%p198_p2)  }
   0x6   : > { %201 = sbr.rel (%p198_p2) target bundleno = 1602 (0x642), region = 40  ;;  %v2572_v1 = vld [vmem:[%s3719_s2 + $0x304] ss:$24 sps:$4 sm:$0xff] (!%p198_p2)   ;;  %1450 = vmatprep.subr.bf16.mxu1 (!%p198_p2), %v2570_v0  ;;  %v2575_v3 = vld [vmem:[%s3719_s2 + $0x300] ss:$24 sps:$4 sm:$0xff] (!%p198_p2)   ;;  %p228_p3 = scmp.lt.s32.totalorder (!%p198_p2), %s2176_s19, 1 }
   0x7   : > { %1493 = vmatprep.subr.bf16.mxu0 (!%p198_p2), %v2572_v1  ;;  %1451 = vmatpush1.bf16.msra.mxu1 (!%p198_p2), %v2574_v2  ;;  %v2578_v5 = vld [vmem:[%s3719_s2 + $0x334] ss:$24 sps:$4 sm:$0xff] (!%p198_p2)   ;;  %v2580_v6 = vld [vmem:[%s3719_s2 + $0x30] ss:$24 sps:$4 sm:$0xff] (!%p198_p2)   ;;  %v2582_v8 = vld [vmem:[%s3719_s2 + $0x64] ss:$24 sps:$4 sm:$0xff] (!%p198_p2)  }
   0x8   : > { %1494 = vmatpush1.bf16.msra.mxu0 (!%p198_p2), %v2575_v3  ;;  %1452 = vmatprep.subr.bf16.mxu1 (!%p198_p2), %v2576_v4  ;;  %v2581_v7 = vld [vmem:[%s3719_s2 + $0x330] ss:$24 sps:$4 sm:$0xff] (!%p198_p2)   ;;  %v2584_v9 = vld [vmem:[%s3719_s2 + $0x364] ss:$24 sps:$4 sm:$0xff] (!%p198_p2)   ;;  %v2586_v10 = vld [vmem:[%s3719_s2 + $0x60] ss:$24 sps:$4 sm:$0xff] (!%p198_p2)  }
   0x9   : > { %1495 = vmatprep.subr.bf16.mxu0 (!%p198_p2), %v2578_v5  ;;  %v2587_v11 = vld [vmem:[%s3719_s2 + $0x360] ss:$24 sps:$4 sm:$0xff] (!%p198_p2)   ;;  %v2588_v12 = vld [vmem:[%s3719_s2 + $0x94] ss:$24 sps:$4 sm:$0xff] (!%p198_p2)   ;;  %v2592_v14 = vld [vmem:[%s3719_s2 + $0x90] ss:$24 sps:$4 sm:$0xff] (!%p198_p2)  }
   0xa   : > { %v2590_v13 = vld [vmem:[%s3719_s2 + $0x394] ss:$24 sps:$4 sm:$0xff] (!%p198_p2)   ;;  %v2593_v15 = vld [vmem:[%s3719_s2 + $0x390] ss:$24 sps:$4 sm:$0xff] (!%p198_p2)   ;;  %v2594_v16 = vld [vmem:[%s3719_s2 + $0xc4] ss:$24 sps:$4 sm:$0xff] (!%p198_p2)  }
   0xb   : > { %1453 = vmatpush1.bf16.msra.mxu1 (!%p198_p2), %v2580_v6  ;;  %v2596_v17 = vld [vmem:[%s3719_s2 + $0x3c4] ss:$24 sps:$4 sm:$0xff] (!%p198_p2)   ;;  %v2598_v18 = vld [vmem:[%s3719_s2 + $0xc0] ss:$24 sps:$4 sm:$0xff] (!%p198_p2)   ;;  %v2600_v20 = vld [vmem:[%s3719_s2 + $0xf4] ss:$24 sps:$4 sm:$0xff] (!%p198_p2)  }
   0xc   : > { %1496 = vmatpush1.bf16.msra.mxu0 (!%p198_p2), %v2581_v7  ;;  %1454 = vmatprep.subr.bf16.mxu1 (!%p198_p2), %v2582_v8  ;;  %v2599_v19 = vld [vmem:[%s3719_s2 + $0x3c0] ss:$24 sps:$4 sm:$0xff] (!%p198_p2)   ;;  %v2602_v21 = vld [vmem:[%s3719_s2 + $0x3f4] ss:$24 sps:$4 sm:$0xff] (!%p198_p2)   ;;  %v2604_v22 = vld [vmem:[%s3719_s2 + $0xf0] ss:$24 sps:$4 sm:$0xff] (!%p198_p2)  }
   0xd   : > { %1497 = vmatprep.subr.bf16.mxu0 %v2584_v9  ;;  %v2605_v23 = vld [vmem:[%s3719_s2 + $0x3f0] ss:$24 sps:$4 sm:$0xff]   ;;  %v2606_v24 = vld [vmem:[%s3719_s2 + $0x124] ss:$24 sps:$4 sm:$0xff]   ;;  %v2610_v26 = vld [vmem:[%s3719_s2 + $0x120] ss:$24 sps:$4 sm:$0xff]  }
   0xe   : > { %v2608_v25 = vld [vmem:[%s3719_s2 + $0x424] ss:$24 sps:$4 sm:$0xff]   ;;  %v2611_v27 = vld [vmem:[%s3719_s2 + $0x420] ss:$24 sps:$4 sm:$0xff]   ;;  %v2612_v28 = vld [vmem:[%s3719_s2 + $0x154] ss:$24 sps:$4 sm:$0xff]  }
   0xf   : > { %1455 = vmatpush1.bf16.msra.mxu1 %v2586_v10  ;;  %v2614_v29 = vld [vmem:[%s3719_s2 + $0x454] ss:$24 sps:$4 sm:$0xff]   ;;  %v2616_v30 = vld [vmem:[%s3719_s2 + $0x150] ss:$24 sps:$4 sm:$0xff]   ;;  %v2618_v32 = vld [vmem:[%s3719_s2 + $0x184] ss:$24 sps:$4 sm:$0xff]  }
  0x10   : > { %1498 = vmatpush1.bf16.msra.mxu0 %v2587_v11  ;;  %1456 = vmatprep.subr.bf16.mxu1 %v2588_v12  ;;  %v2617_v31 = vld [vmem:[%s3719_s2 + $0x450] ss:$24 sps:$4 sm:$0xff]   ;;  %v2620_v33 = vld [vmem:[%s3719_s2 + $0x484] ss:$24 sps:$4 sm:$0xff]   ;;  %v2622_v34 = vld [vmem:[%s3719_s2 + $0x180] ss:$24 sps:$4 sm:$0xff]  }
  0x11   : > { %1499 = vmatprep.subr.bf16.mxu0 %v2590_v13  ;;  %v2623_v35 = vld [vmem:[%s3719_s2 + $0x480] ss:$24 sps:$4 sm:$0xff]   ;;  %v2624_v36 = vld [vmem:[%s3719_s2 + $0x1b4] ss:$24 sps:$4 sm:$0xff]   ;;  %s3724_s19 = smov (!%p228_p3, %s2176_s19), 1  ;;  %vm1924_vm0 = vcmask 408968  }
  0x12   : > { %v2626_v37 = vld [vmem:[%s3719_s2 + $0x4b4] ss:$24 sps:$4 sm:$0xff]   ;;  %v2628_v38 = vld [vmem:[%s3719_s2 + $0x1b0] ss:$24 sps:$4 sm:$0xff]   ;;  %v2630_v40 = vld [vmem:[%s3719_s2 + $0x1e4] ss:$24 sps:$4 sm:$0xff]   ;;  %s240_s14 = scalar_lea.vmem %s3722_s5, %s3724_s19 }
  0x13   : > { %1457 = vmatpush1.bf16.msra.mxu1 %v2592_v14  ;;  %v2629_v39 = vld [vmem:[%s3719_s2 + $0x4b0] ss:$24 sps:$4 sm:$0xff]   ;;  %s2389_s8 = sshll.u32 %s3724_s19, 3  ;;  %v2632_v41 = vld [vmem:[%s3719_s2 + $0x4e4] ss:$24 sps:$4 sm:$0xff]   ;;  %vm1965_vm1 = vcmask 523264  }
  0x14   : > { %1500 = vmatpush1.bf16.msra.mxu0 %v2593_v15  ;;  %1458 = vmatprep.subr.bf16.mxu1 %v2594_v16  ;;  %v2634_v42 = vld [vmem:[%s3719_s2 + $0x1e0] ss:$24 sps:$4 sm:$0xff]   ;;  %s237_s17 = scalar_lea.vmem %s3718_s1, %s2389_s8  ;;  %v2636_v44 = vld [vmem:[%s3719_s2 + $0x214] ss:$24 sps:$4 sm:$0xff]   ;;  %s232_s24 = scalar_lea.vmem %s3717_s0, %s2389_s8  ;;  %v2640_v46 = vld [vmem:[%s3719_s2 + $0x210] ss:$24 sps:$4 sm:$0xff]  }
  0x15   : > { %1501 = vmatprep.subr.bf16.mxu0 %v2596_v17  ;;  %v2635_v43 = vld [vmem:[%s3719_s2 + $0x4e0] ss:$24 sps:$4 sm:$0xff]   ;;  %v2638_v45 = vld [vmem:[%s3719_s2 + $0x514] ss:$24 sps:$4 sm:$0xff]   ;;  %v2641_v47 = vld [vmem:[%s3719_s2 + $0x510] ss:$24 sps:$4 sm:$0xff]  }
  0x16   : > { %v241_v48 = vld [vmem:[%s237_s17] sm:$0xf]  ;;  %v242_v49 = vld [vmem:[%s237_s17 + $0x4] sm:$0x3]  ;;  %v2648_v1 = vld [vmem:[%s3719_s2 + $0x274] ss:$24 sps:$4 sm:$0xff]  }
  0x17   : > { %1459 = vmatpush1.bf16.msra.mxu1 %v2598_v18  ;;  %v243_v50 = vld [vmem:[%s232_s24] sm:$0xf]  ;;  %v244_v51 = vld [vmem:[%s232_s24 + $0x4] sm:$0x3]  ;;  %245 = vst [vmem:[#allocation2] sm:$0xf] %v241_v48  ;;  %v2186_v53 = vcombine.low %v241_v48, %v242_v49 }
  0x18   : > { %1502 = vmatpush1.bf16.msra.mxu0 %v2599_v19  ;;  %1460 = vmatprep.subr.bf16.mxu1 %v2600_v20  ;;  %v2642_v52 = vld [vmem:[%s3719_s2 + $0x244] ss:$24 sps:$4 sm:$0xff]   ;;  %v2187_v54 = vcombine.low %v243_v50, %v244_v51  ;;  %v2185_v55 = vcombine.low %v243_v50, %v243_v50  ;;  %v2646_v57 = vld [vmem:[%s3719_s2 + $0x240] ss:$24 sps:$4 sm:$0xff]   ;;  %v2650_v6 = vld [vmem:[%s3719_s2 + $0x574] ss:$24 sps:$4 sm:$0xff]  }
  0x19   : > { %1503 = vmatprep.subr.bf16.mxu0 %v2602_v21  ;;  %v2644_v56 = vld [vmem:[%s3719_s2 + $0x544] ss:$24 sps:$4 sm:$0xff]   ;;  %v257_v58 = vshrl.u32 %v2186_v53, 16  ;;  %v259_v59 = vshll.u32 %v2186_v53, 16  ;;  %v2647_v62 = vld [vmem:[%s3719_s2 + $0x540] ss:$24 sps:$4 sm:$0xff]  }
  0x1a   : > { %v269_v60 = vshrl.u32 %v2187_v54, 16  ;;  %v272_v61 = vshll.u32 %v2187_v54, 16  ;;  %250 = vst [vmem:[#allocation2] sm:$0xf0] %v2185_v55  ;;  %v278_v63 = vrot.slane %v2186_v53, 1  ;;  %v281_v0 = vrot.slane %v2187_v54, 5 }
  0x1b   : > { %1461 = vmatpush1.bf16.msra.mxu1 %v2604_v22  ;;  %v261_v2 = vrot.slane %v259_v59, 1  ;;  %v284_v5 = vrot.slane %v257_v58, 1  ;;  %v285_v7 = vrot.slane %v259_v59, 2  ;;  %v2652_v12 = vld [vmem:[%s3719_s2 + $0x270] ss:$24 sps:$4 sm:$0xff]   ;;  %s2894_s28 = smov 64  }
  0x1c   : > { %1504 = vmatpush1.bf16.msra.mxu0 %v2605_v23  ;;  %1462 = vmatprep.subr.bf16.mxu1 %v2606_v24  ;;  %v271_v3 = vrot.slane %v269_v60, 4  ;;  %v274_v4 = vrot.slane %v272_v61, 5  ;;  %v289_v8 = vrot.slane %v269_v60, 5  ;;  %v290_v9 = vrot.slane %v272_v61, 6  ;;  %280 = vst [vmem:[#allocation2 + $0x10] sm:$0xf] %v278_v63 }
  0x1d   : > { %1505 = vmatprep.subr.bf16.mxu0 %v2608_v25  ;;  %283 = vst [vmem:[#allocation2 + $0x10] sm:$0xf0] %v281_v0  ;;  %v262_v10 = vor.u32 %v261_v2, %v257_v58  ;;  %v286_v13 = vor.u32 %v285_v7, %v284_v5  ;;  %v2653_v15 = vld [vmem:[%s3719_s2 + $0x570] ss:$24 sps:$4 sm:$0xff]   ;;  %v2654_v16 = vld [vmem:[%s3719_s2 + $0x2a4] ss:$24 sps:$4 sm:$0xff]  }
  0x1e   : > { %v275_v11 = vor.u32 %v274_v4, %v271_v3  ;;  %v291_v14 = vor.u32 %v290_v9, %v289_v8  ;;  %v2656_v17 = vld [vmem:[%s3719_s2 + $0x5a4] ss:$24 sps:$4 sm:$0xff]   ;;  %v2658_v18 = vld [vmem:[%s3719_s2 + $0x2a0] ss:$24 sps:$4 sm:$0xff]   ;;  %v2660_v20 = vld [vmem:[%s3719_s2 + $0x2d4] ss:$24 sps:$4 sm:$0xff]  }
  0x1f   : > { %1463 = vmatpush1.bf16.msra.mxu1 %v2610_v26  ;;  %264 = vst [vmem:[#allocation2 + $0x8] sm:$0xf] %v262_v10  ;;  %288 = vst [vmem:[#allocation2 + $0x18] sm:$0xf] %v286_v13  ;;  %v2659_v19 = vld [vmem:[%s3719_s2 + $0x5a0] ss:$24 sps:$4 sm:$0xff]  }
  0x20   : > { %1506 = vmatpush1.bf16.msra.mxu0 %v2611_v27  ;;  %1464 = vmatprep.subr.bf16.mxu1 %v2612_v28  ;;  %277 = vst [vmem:[#allocation2 + $0x8] sm:$0xf0] %v275_v11  ;;  %293 = vst [vmem:[#allocation2 + $0x18] sm:$0xf0] %v291_v14  ;;  %v2662_v21 = vld [vmem:[%s3719_s2 + $0x5d4] ss:$24 sps:$4 sm:$0xff]  }
  0x21   : > { %1507 = vmatprep.subr.bf16.mxu0 %v2614_v29  ;;  %v2664_v22 = vld [vmem:[%s3719_s2 + $0x2d0] ss:$24 sps:$4 sm:$0xff]   ;;  %v2671_v26 = vld [vmem:[%s3719_s2 + $0xc] ss:$24 sps:$4 sm:$0xff]   ;;  %v2701_v48 = vld [vmem:[%s3719_s2 + $0xfc] ss:$24 sps:$4 sm:$0xff]  }
  0x22   : > { %v2665_v23 = vld [vmem:[%s3719_s2 + $0x5d0] ss:$24 sps:$4 sm:$0xff]   ;;  %v2674_v27 = vld [vmem:[%s3719_s2 + $0x14] ss:$24 sps:$4 sm:$0xff]   ;;  %v2704_v49 = vld [vmem:[%s3719_s2 + $0x104] ss:$24 sps:$4 sm:$0xff]  }
  0x23   : > { %1465 = vmatpush1.bf16.msra.mxu1 %v2616_v30  ;;  %v2669_v28 = vld [vmem:[%s3719_s2 + $0x8] ss:$24 sps:$4 sm:$0xff]   ;;  %v2699_v50 = vld [vmem:[%s3719_s2 + $0xf8] ss:$24 sps:$4 sm:$0xff]   ;;  %v2710_v53 = vld [vmem:[%s3719_s2 + $0x134] ss:$24 sps:$4 sm:$0xff]  }
  0x24   : > { %1508 = vmatpush1.bf16.msra.mxu0 %v2617_v31  ;;  %1466 = vmatprep.subr.bf16.mxu1 %v2618_v32  ;;  %v2672_v29 = vld [vmem:[%s3719_s2 + $0x10] ss:$24 sps:$4 sm:$0xff]   ;;  %v3153_v30 = vld [vmem:[#allocation2] sm:$0xff]  ;;  %v2677_v32 = vld [vmem:[%s3719_s2 + $0x3c] ss:$24 sps:$4 sm:$0xff]   ;;  %vm2115_vm11 = vcmask 0  }
  0x25   : > { %1509 = vmatprep.subr.bf16.mxu0 %v2620_v33  ;;  %v3155_v31 = vld [vmem:[#allocation2 + $0x10] sm:$0xff]  ;;  %v2680_v33 = vld [vmem:[%s3719_s2 + $0x44] ss:$24 sps:$4 sm:$0xff]   ;;  %v2702_v51 = vld [vmem:[%s3719_s2 + $0x100] ss:$24 sps:$4 sm:$0xff]  }
  0x26   : > { %v2705_v54 = vld [vmem:[%s3719_s2 + $0x128] ss:$24 sps:$4 sm:$0xff]   ;;  %v2711_v58 = vld [vmem:[%s3719_s2 + $0x158] ss:$24 sps:$4 sm:$0xff]   ;;  %v2719_v60 = vld [vmem:[%s3719_s2 + $0x18c] ss:$24 sps:$4 sm:$0xff]  }
  0x27   : > { %1467 = vmatpush1.bf16.msra.mxu1 %v2622_v34  ;;  %v295_v24 = vld [vmem:[#allocation2 + $0x8] sm:$0xff]  ;;  %v3138_v25 = vld [vmem:[#allocation2 + $0x18] sm:$0xff] }
  0x28   : > { %1510 = vmatpush1.bf16.msra.mxu0 %v2623_v35  ;;  %1468 = vmatprep.subr.bf16.mxu1 %v2624_v36  ;;  %v2675_v34 = vld [vmem:[%s3719_s2 + $0x38] ss:$24 sps:$4 sm:$0xff]   ;;  %v2683_v36 = vld [vmem:[%s3719_s2 + $0x6c] ss:$24 sps:$4 sm:$0xff]   ;;  %v2725_v0 = vld [vmem:[%s3719_s2 + $0x1bc] ss:$24 sps:$4 sm:$0xff]  }
  0x29   : > { %1511 = vmatprep.subr.bf16.mxu0 %v2626_v37  ;;  %1482 = vmatprep.mubr.bf16.mxu1 %v295_v24  ;;  %v2678_v35 = vld [vmem:[%s3719_s2 + $0x40] ss:$24 sps:$4 sm:$0xff]   ;;  %v2686_v37 = vld [vmem:[%s3719_s2 + $0x74] ss:$24 sps:$4 sm:$0xff]   ;;  %v2708_v55 = vld [vmem:[%s3719_s2 + $0x130] ss:$24 sps:$4 sm:$0xff]  }
  0x2a   : > { %1525 = vmatprep.mubr.bf16.mxu0 %v3138_v25  ;;  %v2714_v59 = vld [vmem:[%s3719_s2 + $0x160] ss:$24 sps:$4 sm:$0xff]   ;;  %v2722_v61 = vld [vmem:[%s3719_s2 + $0x194] ss:$24 sps:$4 sm:$0xff]   ;;  %v2720_v63 = vld [vmem:[%s3719_s2 + $0x190] ss:$24 sps:$4 sm:$0xff]  }
  0x2b   : > { %1469 = vmatpush1.bf16.msra.mxu1 %v2628_v38  ;;  %v2681_v38 = vld [vmem:[%s3719_s2 + $0x68] ss:$24 sps:$4 sm:$0xff]   ;;  %v2723_v2 = vld [vmem:[%s3719_s2 + $0x1b8] ss:$24 sps:$4 sm:$0xff]   ;;  %v2731_v4 = vld [vmem:[%s3719_s2 + $0x1ec] ss:$24 sps:$4 sm:$0xff]  }
  0x2c   : > { %1512 = vmatpush1.bf16.msra.mxu0 %v2629_v39  ;;  %1470 = vmatprep.subr.bf16.mxu1 %v2630_v40  ;;  %v2684_v39 = vld [vmem:[%s3719_s2 + $0x70] ss:$24 sps:$4 sm:$0xff]   ;;  %v2689_v40 = vld [vmem:[%s3719_s2 + $0x9c] ss:$24 sps:$4 sm:$0xff]   ;;  %v2726_v3 = vld [vmem:[%s3719_s2 + $0x1c0] ss:$24 sps:$4 sm:$0xff]  }
  0x2d   : > { %1513 = vmatprep.subr.bf16.mxu0 %v2632_v41  ;;  %v2692_v41 = vld [vmem:[%s3719_s2 + $0xa4] ss:$24 sps:$4 sm:$0xff]   ;;  %v2734_v5 = vld [vmem:[%s3719_s2 + $0x1f4] ss:$24 sps:$4 sm:$0xff]   ;;  %v2732_v7 = vld [vmem:[%s3719_s2 + $0x1f0] ss:$24 sps:$4 sm:$0xff]  }
  0x2e   : > { %v2737_v8 = vld [vmem:[%s3719_s2 + $0x21c] ss:$24 sps:$4 sm:$0xff]   ;;  %v2735_v10 = vld [vmem:[%s3719_s2 + $0x218] ss:$24 sps:$4 sm:$0xff]   ;;  %v2741_v14 = vld [vmem:[%s3719_s2 + $0x248] ss:$24 sps:$4 sm:$0xff]  }
  0x2f   : > { %1471 = vmatpush1.bf16.msra.mxu1 %v2634_v42  ;;  %v2687_v42 = vld [vmem:[%s3719_s2 + $0x98] ss:$24 sps:$4 sm:$0xff]   ;;  %v2740_v9 = vld [vmem:[%s3719_s2 + $0x224] ss:$24 sps:$4 sm:$0xff]   ;;  %v2746_v13 = vld [vmem:[%s3719_s2 + $0x254] ss:$24 sps:$4 sm:$0xff]  }
  0x30   : > { %1514 = vmatpush1.bf16.msra.mxu0 %v2635_v43  ;;  %1472 = vmatprep.subr.bf16.mxu1 %v2636_v44  ;;  %v2690_v43 = vld [vmem:[%s3719_s2 + $0xa0] ss:$24 sps:$4 sm:$0xff]   ;;  %v2695_v44 = vld [vmem:[%s3719_s2 + $0xcc] ss:$24 sps:$4 sm:$0xff]  }
  0x31   : > { %1515 = vmatprep.subr.bf16.mxu0 %v2638_v45  ;;  %v2698_v45 = vld [vmem:[%s3719_s2 + $0xd4] ss:$24 sps:$4 sm:$0xff]   ;;  %v2738_v11 = vld [vmem:[%s3719_s2 + $0x220] ss:$24 sps:$4 sm:$0xff]  }
  0x33   : > { %1473 = vmatpush1.bf16.msra.mxu1 %v2640_v46  ;;  %v2693_v46 = vld [vmem:[%s3719_s2 + $0xc8] ss:$24 sps:$4 sm:$0xff]  }
  0x34   : > { %1516 = vmatpush1.bf16.msra.mxu0 %v2641_v47  ;;  %1474 = vmatprep.subr.bf16.mxu1 %v2642_v52  ;;  %v2696_v47 = vld [vmem:[%s3719_s2 + $0xd0] ss:$24 sps:$4 sm:$0xff]   ;;  %v2707_v52 = vld [vmem:[%s3719_s2 + $0x12c] ss:$24 sps:$4 sm:$0xff]  }
  0x35   : > { %1517 = vmatprep.subr.bf16.mxu0 %v2644_v56  ;;  %v2713_v56 = vld [vmem:[%s3719_s2 + $0x15c] ss:$24 sps:$4 sm:$0xff]  }
  0x37   : > { %1475 = vmatpush1.bf16.msra.mxu1 %v2646_v57  ;;  %v2716_v57 = vld [vmem:[%s3719_s2 + $0x164] ss:$24 sps:$4 sm:$0xff]  }
  0x38   : > { %1518 = vmatpush1.bf16.msra.mxu0 %v2647_v62  ;;  %1476 = vmatprep.subr.bf16.mxu1 %v2648_v1  ;;  %v2717_v62 = vld [vmem:[%s3719_s2 + $0x188] ss:$24 sps:$4 sm:$0xff]   ;;  %v2728_v1 = vld [vmem:[%s3719_s2 + $0x1c4] ss:$24 sps:$4 sm:$0xff]  }
  0x39   : > { %1519 = vmatprep.subr.bf16.mxu0 %v2650_v6  ;;  %v2729_v6 = vld [vmem:[%s3719_s2 + $0x1e8] ss:$24 sps:$4 sm:$0xff]  }
  0x3b   : > { %1477 = vmatpush1.bf16.msra.mxu1 %v2652_v12  ;;  %v2743_v12 = vld [vmem:[%s3719_s2 + $0x24c] ss:$24 sps:$4 sm:$0xff]  }
  0x3c   : > { %1520 = vmatpush1.bf16.msra.mxu0 %v2653_v15  ;;  %1478 = vmatprep.subr.bf16.mxu1 %v2654_v16  ;;  %v2744_v15 = vld [vmem:[%s3719_s2 + $0x250] ss:$24 sps:$4 sm:$0xff]   ;;  %v2749_v16 = vld [vmem:[%s3719_s2 + $0x27c] ss:$24 sps:$4 sm:$0xff]  }
  0x3d   : > { %1521 = vmatprep.subr.bf16.mxu0 %v2656_v17  ;;  %v2752_v17 = vld [vmem:[%s3719_s2 + $0x284] ss:$24 sps:$4 sm:$0xff]  }
  0x3f   : > { %1479 = vmatpush1.bf16.msra.mxu1 %v2658_v18  ;;  %v2747_v18 = vld [vmem:[%s3719_s2 + $0x278] ss:$24 sps:$4 sm:$0xff]  }
  0x40   : > { %1522 = vmatpush1.bf16.msra.mxu0 %v2659_v19  ;;  %1480 = vmatprep.subr.bf16.mxu1 %v2660_v20  ;;  %v2750_v19 = vld [vmem:[%s3719_s2 + $0x280] ss:$24 sps:$4 sm:$0xff]   ;;  %v2755_v20 = vld [vmem:[%s3719_s2 + $0x2ac] ss:$24 sps:$4 sm:$0xff]  }
  0x41   : > { %1523 = vmatprep.subr.bf16.mxu0 %v2662_v21  ;;  %v2758_v21 = vld [vmem:[%s3719_s2 + $0x2b4] ss:$24 sps:$4 sm:$0xff]  }
  0x43   : > { %1481 = vmatpush1.bf16.msra.mxu1 %v2664_v22  ;;  %v2753_v22 = vld [vmem:[%s3719_s2 + $0x2a8] ss:$24 sps:$4 sm:$0xff]  }
  0x44   : > { %1524 = vmatpush1.bf16.msra.mxu0 %v2665_v23  ;;  %1536 = vmatprep.subr.bf16.mxu1 %v2671_v26  ;;  %v2756_v23 = vld [vmem:[%s3719_s2 + $0x2b0] ss:$24 sps:$4 sm:$0xff]   ;;  %v2764_v26 = vld [vmem:[%s3719_s2 + $0x2e4] ss:$24 sps:$4 sm:$0xff]  }
  0x45   : > { %1622 = vmatprep.subr.bf16.mxu0 %v2674_v27  ;;  %v2759_v27 = vld [vmem:[%s3719_s2 + $0x2d8] ss:$24 sps:$4 sm:$0xff]  }
  0x46   : > { %1483 = vmatmul.mubr.bf16.vlgmr.msra.gmra.mrb[0].mxu1 %v3153_v30 }
  0x47   : > { %1526 = vmatmul.mubr.bf16.vlgmr.msra.gmra.mrb[0].mxu0 %v3155_v31  ;;  %1537 = vmatpush1.bf16.msra.mxu1 %v2669_v28  ;;  %v2762_v28 = vld [vmem:[%s3719_s2 + $0x2e0] ss:$24 sps:$4 sm:$0xff]  }
  0x48   : > { %1623 = vmatpush1.bf16.msra.mxu0 %v2672_v29  ;;  %1538 = vmatprep.subr.bf16.mxu1 %v2677_v32  ;;  %v2767_v29 = vld [vmem:[%s3719_s2 + $0x30c] ss:$24 sps:$4 sm:$0xff]  }
  0x49   : > { %1624 = vmatprep.subr.bf16.mxu0 %v2680_v33  ;;  %1568 = vmatprep.mubr.bf16.mxu1 %v295_v24  ;;  %v2770_v32 = vld [vmem:[%s3719_s2 + $0x314] ss:$24 sps:$4 sm:$0xff]   ;;  %v2765_v33 = vld [vmem:[%s3719_s2 + $0x308] ss:$24 sps:$4 sm:$0xff]  }
  0x4a   : > { %1654 = vmatprep.mubr.bf16.mxu0 %v295_v24  ;;  %v2761_v24 = vld [vmem:[%s3719_s2 + $0x2dc] ss:$24 sps:$4 sm:$0xff]  }
  0x4b   : > { %1539 = vmatpush1.bf16.msra.mxu1 %v2675_v34  ;;  %v2768_v34 = vld [vmem:[%s3719_s2 + $0x310] ss:$24 sps:$4 sm:$0xff]  }
  0x4c   : > { %1625 = vmatpush1.bf16.msra.mxu0 %v2678_v35  ;;  %1540 = vmatprep.subr.bf16.mxu1 %v2683_v36  ;;  %v2773_v35 = vld [vmem:[%s3719_s2 + $0x33c] ss:$24 sps:$4 sm:$0xff]  }
  0x4d   : > { %1626 = vmatprep.subr.bf16.mxu0 %v2686_v37  ;;  %v2776_v36 = vld [vmem:[%s3719_s2 + $0x344] ss:$24 sps:$4 sm:$0xff]   ;;  %v2771_v37 = vld [vmem:[%s3719_s2 + $0x338] ss:$24 sps:$4 sm:$0xff]  }
  0x4f   : > { %1541 = vmatpush1.bf16.msra.mxu1 %v2681_v38  ;;  %v2774_v38 = vld [vmem:[%s3719_s2 + $0x340] ss:$24 sps:$4 sm:$0xff]  }
  0x50   : > { %1627 = vmatpush1.bf16.msra.mxu0 %v2684_v39  ;;  %1542 = vmatprep.subr.bf16.mxu1 %v2689_v40  ;;  %v2779_v39 = vld [vmem:[%s3719_s2 + $0x36c] ss:$24 sps:$4 sm:$0xff]   ;;  %v2777_v40 = vld [vmem:[%s3719_s2 + $0x368] ss:$24 sps:$4 sm:$0xff]  }
  0x51   : > { %1628 = vmatprep.subr.bf16.mxu0 %v2692_v41  ;;  %v2780_v41 = vld [vmem:[%s3719_s2 + $0x370] ss:$24 sps:$4 sm:$0xff]  }
  0x53   : > { %1543 = vmatpush1.bf16.msra.mxu1 %v2687_v42  ;;  %v2785_v42 = vld [vmem:[%s3719_s2 + $0x39c] ss:$24 sps:$4 sm:$0xff]  }
  0x54   : > { %1629 = vmatpush1.bf16.msra.mxu0 %v2690_v43  ;;  %1544 = vmatprep.subr.bf16.mxu1 %v2695_v44  ;;  %v2783_v43 = vld [vmem:[%s3719_s2 + $0x398] ss:$24 sps:$4 sm:$0xff]  }
  0x55   : > { %1630 = vmatprep.subr.bf16.mxu0 %v2698_v45  ;;  %v2786_v44 = vld [vmem:[%s3719_s2 + $0x3a0] ss:$24 sps:$4 sm:$0xff]   ;;  %v2791_v45 = vld [vmem:[%s3719_s2 + $0x3cc] ss:$24 sps:$4 sm:$0xff]  }
  0x57   : > { %1545 = vmatpush1.bf16.msra.mxu1 %v2693_v46  ;;  %v2794_v46 = vld [vmem:[%s3719_s2 + $0x3d4] ss:$24 sps:$4 sm:$0xff]  }
  0x58   : > { %1631 = vmatpush1.bf16.msra.mxu0 %v2696_v47  ;;  %1546 = vmatprep.subr.bf16.mxu1 %v2701_v48  ;;  %v2789_v47 = vld [vmem:[%s3719_s2 + $0x3c8] ss:$24 sps:$4 sm:$0xff]  }
  0x59   : > { %1632 = vmatprep.subr.bf16.mxu0 %v2704_v49  ;;  %v2792_v48 = vld [vmem:[%s3719_s2 + $0x3d0] ss:$24 sps:$4 sm:$0xff]   ;;  %v2797_v49 = vld [vmem:[%s3719_s2 + $0x3fc] ss:$24 sps:$4 sm:$0xff]  }
  0x5b   : > { %1547 = vmatpush1.bf16.msra.mxu1 %v2699_v50  ;;  %v2800_v50 = vld [vmem:[%s3719_s2 + $0x404] ss:$24 sps:$4 sm:$0xff]  }
  0x5c   : > { %1633 = vmatpush1.bf16.msra.mxu0 %v2702_v51  ;;  %1548 = vmatprep.subr.bf16.mxu1 %v2707_v52  ;;  %v2795_v51 = vld [vmem:[%s3719_s2 + $0x3f8] ss:$24 sps:$4 sm:$0xff]  }
  0x5d   : > { %1634 = vmatprep.subr.bf16.mxu0 %v2710_v53  ;;  %v2798_v52 = vld [vmem:[%s3719_s2 + $0x400] ss:$24 sps:$4 sm:$0xff]   ;;  %v2803_v53 = vld [vmem:[%s3719_s2 + $0x42c] ss:$24 sps:$4 sm:$0xff]  }
  0x5f   : > { %1549 = vmatpush1.bf16.msra.mxu1 %v2705_v54  ;;  %v2806_v54 = vld [vmem:[%s3719_s2 + $0x434] ss:$24 sps:$4 sm:$0xff]  }
  0x60   : > { %1635 = vmatpush1.bf16.msra.mxu0 %v2708_v55  ;;  %1550 = vmatprep.subr.bf16.mxu1 %v2713_v56  ;;  %v2801_v55 = vld [vmem:[%s3719_s2 + $0x428] ss:$24 sps:$4 sm:$0xff]  }
  0x61   : > { %1636 = vmatprep.subr.bf16.mxu0 %v2716_v57  ;;  %v2804_v56 = vld [vmem:[%s3719_s2 + $0x430] ss:$24 sps:$4 sm:$0xff]   ;;  %v2809_v57 = vld [vmem:[%s3719_s2 + $0x45c] ss:$24 sps:$4 sm:$0xff]  }
  0x63   : > { %1551 = vmatpush1.bf16.msra.mxu1 %v2711_v58  ;;  %v2812_v58 = vld [vmem:[%s3719_s2 + $0x464] ss:$24 sps:$4 sm:$0xff]  }
  0x64   : > { %1637 = vmatpush1.bf16.msra.mxu0 %v2714_v59  ;;  %1552 = vmatprep.subr.bf16.mxu1 %v2719_v60  ;;  %v2807_v59 = vld [vmem:[%s3719_s2 + $0x458] ss:$24 sps:$4 sm:$0xff]  }
  0x65   : > { %1638 = vmatprep.subr.bf16.mxu0 %v2722_v61  ;;  %v2810_v60 = vld [vmem:[%s3719_s2 + $0x460] ss:$24 sps:$4 sm:$0xff]   ;;  %v2815_v61 = vld [vmem:[%s3719_s2 + $0x48c] ss:$24 sps:$4 sm:$0xff]  }
  0x67   : > { %1553 = vmatpush1.bf16.msra.mxu1 %v2717_v62  ;;  %v2818_v62 = vld [vmem:[%s3719_s2 + $0x494] ss:$24 sps:$4 sm:$0xff]  }
  0x68   : > { %1639 = vmatpush1.bf16.msra.mxu0 %v2720_v63  ;;  %1554 = vmatprep.subr.bf16.mxu1 %v2725_v0  ;;  %v2813_v63 = vld [vmem:[%s3719_s2 + $0x488] ss:$24 sps:$4 sm:$0xff]  }
  0x69   : > { %1640 = vmatprep.subr.bf16.mxu0 %v2728_v1  ;;  %v2816_v0 = vld [vmem:[%s3719_s2 + $0x490] ss:$24 sps:$4 sm:$0xff]   ;;  %v2821_v1 = vld [vmem:[%s3719_s2 + $0x4bc] ss:$24 sps:$4 sm:$0xff]  }
  0x6b   : > { %1555 = vmatpush1.bf16.msra.mxu1 %v2723_v2  ;;  %v2824_v2 = vld [vmem:[%s3719_s2 + $0x4c4] ss:$24 sps:$4 sm:$0xff]  }
  0x6c   : > { %1641 = vmatpush1.bf16.msra.mxu0 %v2726_v3  ;;  %1556 = vmatprep.subr.bf16.mxu1 %v2731_v4  ;;  %v2819_v3 = vld [vmem:[%s3719_s2 + $0x4b8] ss:$24 sps:$4 sm:$0xff]  }
  0x6d   : > { %1642 = vmatprep.subr.bf16.mxu0 %v2734_v5  ;;  %v2822_v4 = vld [vmem:[%s3719_s2 + $0x4c0] ss:$24 sps:$4 sm:$0xff]   ;;  %v2827_v5 = vld [vmem:[%s3719_s2 + $0x4ec] ss:$24 sps:$4 sm:$0xff]  }
  0x6f   : > { %1557 = vmatpush1.bf16.msra.mxu1 %v2729_v6  ;;  %v2830_v6 = vld [vmem:[%s3719_s2 + $0x4f4] ss:$24 sps:$4 sm:$0xff]  }
  0x70   : > { %1643 = vmatpush1.bf16.msra.mxu0 %v2732_v7  ;;  %1558 = vmatprep.subr.bf16.mxu1 %v2737_v8  ;;  %v2825_v7 = vld [vmem:[%s3719_s2 + $0x4e8] ss:$24 sps:$4 sm:$0xff]  }
  0x71   : > { %1644 = vmatprep.subr.bf16.mxu0 %v2740_v9  ;;  %v2828_v8 = vld [vmem:[%s3719_s2 + $0x4f0] ss:$24 sps:$4 sm:$0xff]   ;;  %v2833_v9 = vld [vmem:[%s3719_s2 + $0x51c] ss:$24 sps:$4 sm:$0xff]  }
  0x73   : > { %1559 = vmatpush1.bf16.msra.mxu1 %v2735_v10  ;;  %v2836_v10 = vld [vmem:[%s3719_s2 + $0x524] ss:$24 sps:$4 sm:$0xff]  }
  0x74   : > { %1645 = vmatpush1.bf16.msra.mxu0 %v2738_v11  ;;  %1560 = vmatprep.subr.bf16.mxu1 %v2743_v12  ;;  %v2831_v11 = vld [vmem:[%s3719_s2 + $0x518] ss:$24 sps:$4 sm:$0xff]  }
  0x75   : > { %1646 = vmatprep.subr.bf16.mxu0 %v2746_v13  ;;  %v2834_v12 = vld [vmem:[%s3719_s2 + $0x520] ss:$24 sps:$4 sm:$0xff]   ;;  %v2839_v13 = vld [vmem:[%s3719_s2 + $0x54c] ss:$24 sps:$4 sm:$0xff]  }
  0x77   : > { %1561 = vmatpush1.bf16.msra.mxu1 %v2741_v14  ;;  %v2842_v14 = vld [vmem:[%s3719_s2 + $0x554] ss:$24 sps:$4 sm:$0xff]  }
  0x78   : > { %1647 = vmatpush1.bf16.msra.mxu0 %v2744_v15  ;;  %1562 = vmatprep.subr.bf16.mxu1 %v2749_v16  ;;  %v2837_v15 = vld [vmem:[%s3719_s2 + $0x548] ss:$24 sps:$4 sm:$0xff]  }
  0x79   : > { %1648 = vmatprep.subr.bf16.mxu0 %v2752_v17  ;;  %v2840_v16 = vld [vmem:[%s3719_s2 + $0x550] ss:$24 sps:$4 sm:$0xff]   ;;  %v2845_v17 = vld [vmem:[%s3719_s2 + $0x57c] ss:$24 sps:$4 sm:$0xff]  }
  0x7b   : > { %1563 = vmatpush1.bf16.msra.mxu1 %v2747_v18  ;;  %v2848_v18 = vld [vmem:[%s3719_s2 + $0x584] ss:$24 sps:$4 sm:$0xff]  }
  0x7c   : > { %1649 = vmatpush1.bf16.msra.mxu0 %v2750_v19  ;;  %1564 = vmatprep.subr.bf16.mxu1 %v2755_v20  ;;  %v2843_v19 = vld [vmem:[%s3719_s2 + $0x578] ss:$24 sps:$4 sm:$0xff]  }
  0x7d   : > { %1650 = vmatprep.subr.bf16.mxu0 %v2758_v21  ;;  %v2846_v20 = vld [vmem:[%s3719_s2 + $0x580] ss:$24 sps:$4 sm:$0xff]   ;;  %v2851_v21 = vld [vmem:[%s3719_s2 + $0x5ac] ss:$24 sps:$4 sm:$0xff]  }
  0x7f   : > { %1565 = vmatpush1.bf16.msra.mxu1 %v2753_v22  ;;  %v2854_v22 = vld [vmem:[%s3719_s2 + $0x5b4] ss:$24 sps:$4 sm:$0xff]  }
  0x80   : > { %1651 = vmatpush1.bf16.msra.mxu0 %v2756_v23  ;;  %1566 = vmatprep.subr.bf16.mxu1 %v2761_v24  ;;  %v2849_v23 = vld [vmem:[%s3719_s2 + $0x5a8] ss:$24 sps:$4 sm:$0xff]  }
  0x81   : > { %1652 = vmatprep.subr.bf16.mxu0 %v2764_v26  ;;  %v2852_v24 = vld [vmem:[%s3719_s2 + $0x5b0] ss:$24 sps:$4 sm:$0xff]   ;;  %v2857_v26 = vld [vmem:[%s3719_s2 + $0x5dc] ss:$24 sps:$4 sm:$0xff]  }
  0x83   : > { %1567 = vmatpush1.bf16.msra.mxu1 %v2759_v27  ;;  %v2860_v27 = vld [vmem:[%s3719_s2 + $0x5e4] ss:$24 sps:$4 sm:$0xff]  }
  0x84   : > { %1653 = vmatpush1.bf16.msra.mxu0 %v2762_v28  ;;  %1579 = vmatprep.subr.bf16.mxu1 %v2767_v29  ;;  %v1742_v28 = vld [vmem:[%s3720_s3 + $0x80] sm:$0xff]  ;;  %v1743_v29 = vld [vmem:[%s3720_s3 + $0x88] sm:$0xff] }
  0x85   : > { %1665 = vmatprep.subr.bf16.mxu0 %v2770_v32  ;;  %v1758_v32 = vld [vmem:[%s3720_s3 + $0x100] sm:$0xff] }
  0x86   : > { %1569 = vmatmul.mubr.bf16.vlgmr.msra.gmra.mrb[4].mxu1 %v3153_v30 }
  0x87   : > { %1655 = vmatmul.mubr.bf16.vlgmr.msra.gmra.mrb[4].mxu0 %v3153_v30  ;;  %1580 = vmatpush1.bf16.msra.mxu1 %v2765_v33  ;;  %v2782_v30 = vld [vmem:[%s3719_s2 + $0x374] ss:$24 sps:$4 sm:$0xff]  }
  0x88   : > { %1666 = vmatpush1.bf16.msra.mxu0 %v2768_v34  ;;  %1581 = vmatprep.subr.bf16.mxu1 %v2773_v35  ;;  %v1759_v33 = vld [vmem:[%s3720_s3 + $0x108] sm:$0xff]  ;;  %v2855_v34 = vld [vmem:[%s3719_s2 + $0x5d8] ss:$24 sps:$4 sm:$0xff]  }
  0x89   : > { %1667 = vmatprep.subr.bf16.mxu0 %v2776_v36  ;;  %1611 = vmatprep.mubr.bf16.mxu1 %v3138_v25  ;;  %v2858_v35 = vld [vmem:[%s3719_s2 + $0x5e0] ss:$24 sps:$4 sm:$0xff]   ;;  %v2482_v36 = vpack.c.bf16 %v1743_v29, %v1742_v28  ;;  %v1756_v29 = vld [vmem:[%s3720_s3 + $0xf0] sm:$0xff] }
  0x8a   : > { %1697 = vmatprep.mubr.bf16.mxu0 %v3138_v25  ;;  %v2788_v25 = vld [vmem:[%s3719_s2 + $0x3a4] ss:$24 sps:$4 sm:$0xff]  }
  0x8b   : > { %1582 = vmatpush1.bf16.msra.mxu1 %v2771_v37  ;;  %v1726_v37 = vld [vmem:[%s3720_s3] sm:$0xff] }
  0x8c   : > { %1668 = vmatpush1.bf16.msra.mxu0 %v2774_v38  ;;  %1583 = vmatprep.subr.bf16.mxu1 %v2779_v39  ;;  %v1727_v38 = vld [vmem:[%s3720_s3 + $0x8] sm:$0xff]  ;;  %v2514_v39 = vpack.c.bf16 %v1759_v33, %v1758_v32  ;;  %v1757_v32 = vld [vmem:[%s3720_s3 + $0xf8] sm:$0xff] }
  0x8d   : > { %1669 = vmatprep.subr.bf16.mxu0 %v2782_v30  ;;  %v1744_v30 = vld [vmem:[%s3720_s3 + $0x90] sm:$0xff] }
  0x8f   : > { %1584 = vmatpush1.bf16.msra.mxu1 %v2777_v40  ;;  %v1745_v40 = vld [vmem:[%s3720_s3 + $0x98] sm:$0xff] }
  0x90   : > { %1670 = vmatpush1.bf16.msra.mxu0 %v2780_v41  ;;  %1585 = vmatprep.subr.bf16.mxu1 %v2785_v42  ;;  %v1760_v41 = vld [vmem:[%s3720_s3 + $0x110] sm:$0xff]  ;;  %v1761_v42 = vld [vmem:[%s3720_s3 + $0x118] sm:$0xff] }
  0x91   : > { %1671 = vmatprep.subr.bf16.mxu0 %v2788_v25  ;;  %v2484_v25 = vpack.c.bf16 %v1727_v38, %v1726_v37  ;;  %v1741_v37 = vld [vmem:[%s3720_s3 + $0x78] sm:$0xff] }
  0x93   : > { %1586 = vmatpush1.bf16.msra.mxu1 %v2783_v43  ;;  %v2486_v43 = vpack.c.bf16 %v1745_v40, %v1744_v30 }
  0x94   : > { %1672 = vmatpush1.bf16.msra.mxu0 %v2786_v44  ;;  %1587 = vmatprep.subr.bf16.mxu1 %v2791_v45  ;;  %v1728_v44 = vld [vmem:[%s3720_s3 + $0x10] sm:$0xff]  ;;  %v1729_v45 = vld [vmem:[%s3720_s3 + $0x18] sm:$0xff] }
  0x95   : > { %1673 = vmatprep.subr.bf16.mxu0 %v2794_v46  ;;  %v2518_v46 = vpack.c.bf16 %v1761_v42, %v1760_v41  ;;  %v1772_v41 = vld [vmem:[%s3720_s3 + $0x170] sm:$0xff]  ;;  %v1773_v42 = vld [vmem:[%s3720_s3 + $0x178] sm:$0xff] }
  0x97   : > { %1588 = vmatpush1.bf16.msra.mxu1 %v2789_v47  ;;  %v1746_v47 = vld [vmem:[%s3720_s3 + $0xa0] sm:$0xff] }
  0x98   : > { %1674 = vmatpush1.bf16.msra.mxu0 %v2792_v48  ;;  %1589 = vmatprep.subr.bf16.mxu1 %v2797_v49  ;;  %v1747_v48 = vld [vmem:[%s3720_s3 + $0xa8] sm:$0xff]  ;;  %v1762_v49 = vld [vmem:[%s3720_s3 + $0x120] sm:$0xff] }
  0x99   : > { %1675 = vmatprep.subr.bf16.mxu0 %v2800_v50  ;;  %v1763_v50 = vld [vmem:[%s3720_s3 + $0x128] sm:$0xff] }
  0x9b   : > { %1590 = vmatpush1.bf16.msra.mxu1 %v2795_v51  ;;  %v2488_v51 = vpack.c.bf16 %v1729_v45, %v1728_v44  ;;  %v2542_v45 = vpack.c.bf16 %v1773_v42, %v1772_v41 }
  0x9c   : > { %1676 = vmatpush1.bf16.msra.mxu0 %v2798_v52  ;;  %1591 = vmatprep.subr.bf16.mxu1 %v2803_v53  ;;  %v2490_v52 = vpack.c.bf16 %v1747_v48, %v1746_v47  ;;  %v1730_v53 = vld [vmem:[%s3720_s3 + $0x20] sm:$0xff] }
  0x9d   : > { %1677 = vmatprep.subr.bf16.mxu0 %v2806_v54  ;;  %v1731_v54 = vld [vmem:[%s3720_s3 + $0x28] sm:$0xff] }
  0x9f   : > { %1592 = vmatpush1.bf16.msra.mxu1 %v2801_v55  ;;  %v2522_v55 = vpack.c.bf16 %v1763_v50, %v1762_v49 }
  0xa0   : > { %1678 = vmatpush1.bf16.msra.mxu0 %v2804_v56  ;;  %1593 = vmatprep.subr.bf16.mxu1 %v2809_v57  ;;  %v1748_v56 = vld [vmem:[%s3720_s3 + $0xb0] sm:$0xff] }
  0xa1   : > { %1679 = vmatprep.subr.bf16.mxu0 %v2812_v58  ;;  %v1764_v57 = vld [vmem:[%s3720_s3 + $0x130] sm:$0xff]  ;;  %v1765_v58 = vld [vmem:[%s3720_s3 + $0x138] sm:$0xff] }
  0xa3   : > { %1594 = vmatpush1.bf16.msra.mxu1 %v2807_v59  ;;  %v2492_v59 = vpack.c.bf16 %v1731_v54, %v1730_v53 }
  0xa4   : > { %1680 = vmatpush1.bf16.msra.mxu0 %v2810_v60  ;;  %1595 = vmatprep.subr.bf16.mxu1 %v2815_v61  ;;  %v1732_v61 = vld [vmem:[%s3720_s3 + $0x30] sm:$0xff] }
  0xa5   : > { %1681 = vmatprep.subr.bf16.mxu0 %v2818_v62  ;;  %v1733_v62 = vld [vmem:[%s3720_s3 + $0x38] sm:$0xff] }
  0xa7   : > { %1596 = vmatpush1.bf16.msra.mxu1 %v2813_v63  ;;  %v2526_v63 = vpack.c.bf16 %v1765_v58, %v1764_v57 }
  0xa8   : > { %1682 = vmatpush1.bf16.msra.mxu0 %v2816_v0  ;;  %1597 = vmatprep.subr.bf16.mxu1 %v2821_v1  ;;  %v1750_v0 = vld [vmem:[%s3720_s3 + $0xc0] sm:$0xff]  ;;  %v1751_v1 = vld [vmem:[%s3720_s3 + $0xc8] sm:$0xff] }
  0xa9   : > { %1683 = vmatprep.subr.bf16.mxu0 %v2824_v2  ;;  %v1766_v2 = vld [vmem:[%s3720_s3 + $0x140] sm:$0xff] }
  0xab   : > { %1598 = vmatpush1.bf16.msra.mxu1 %v2819_v3  ;;  %v1767_v3 = vld [vmem:[%s3720_s3 + $0x148] sm:$0xff] }
  0xac   : > { %1684 = vmatpush1.bf16.msra.mxu0 %v2822_v4  ;;  %1599 = vmatprep.subr.bf16.mxu1 %v2827_v5  ;;  %v2496_v4 = vpack.c.bf16 %v1733_v62, %v1732_v61  ;;  %v2498_v5 = vpack.c.bf16 %v1751_v1, %v1750_v0 }
  0xad   : > { %1685 = vmatprep.subr.bf16.mxu0 %v2830_v6  ;;  %v1734_v6 = vld [vmem:[%s3720_s3 + $0x40] sm:$0xff] }
  0xaf   : > { %1600 = vmatpush1.bf16.msra.mxu1 %v2825_v7  ;;  %v1735_v7 = vld [vmem:[%s3720_s3 + $0x48] sm:$0xff] }
  0xb0   : > { %1686 = vmatpush1.bf16.msra.mxu0 %v2828_v8  ;;  %1601 = vmatprep.subr.bf16.mxu1 %v2833_v9  ;;  %v2530_v8 = vpack.c.bf16 %v1767_v3, %v1766_v2  ;;  %v1752_v9 = vld [vmem:[%s3720_s3 + $0xd0] sm:$0xff] }
  0xb1   : > { %1687 = vmatprep.subr.bf16.mxu0 %v2836_v10  ;;  %v1753_v10 = vld [vmem:[%s3720_s3 + $0xd8] sm:$0xff] }
  0xb3   : > { %1602 = vmatpush1.bf16.msra.mxu1 %v2831_v11  ;;  %v1768_v11 = vld [vmem:[%s3720_s3 + $0x150] sm:$0xff] }
  0xb4   : > { %1688 = vmatpush1.bf16.msra.mxu0 %v2834_v12  ;;  %1603 = vmatprep.subr.bf16.mxu1 %v2839_v13  ;;  %v1769_v12 = vld [vmem:[%s3720_s3 + $0x158] sm:$0xff]  ;;  %v2500_v13 = vpack.c.bf16 %v1735_v7, %v1734_v6 }
  0xb5   : > { %1689 = vmatprep.subr.bf16.mxu0 %v2842_v14  ;;  %v2502_v14 = vpack.c.bf16 %v1753_v10, %v1752_v9 }
  0xb7   : > { %1604 = vmatpush1.bf16.msra.mxu1 %v2837_v15  ;;  %v1736_v15 = vld [vmem:[%s3720_s3 + $0x50] sm:$0xff] }
  0xb8   : > { %1690 = vmatpush1.bf16.msra.mxu0 %v2840_v16  ;;  %1605 = vmatprep.subr.bf16.mxu1 %v2845_v17  ;;  %v1737_v16 = vld [vmem:[%s3720_s3 + $0x58] sm:$0xff]  ;;  %v2534_v17 = vpack.c.bf16 %v1769_v12, %v1768_v11  ;;  %v2893_v11 = vmov 49  }
  0xb9   : > { %1691 = vmatprep.subr.bf16.mxu0 %v2848_v18  ;;  %v1754_v18 = vld [vmem:[%s3720_s3 + $0xe0] sm:$0xff]  ;;  %2568 = vset.pattern.permute.xlu0 %v2893_v11 }
  0xba   : > { %2569 = vset.pattern.permute.xlu1 %v2893_v11 }
  0xbb   : > { %1606 = vmatpush1.bf16.msra.mxu1 %v2843_v19  ;;  %v1755_v19 = vld [vmem:[%s3720_s3 + $0xe8] sm:$0xff] }
  0xbc   : > { %1692 = vmatpush1.bf16.msra.mxu0 %v2846_v20  ;;  %1607 = vmatprep.subr.bf16.mxu1 %v2851_v21  ;;  %v2504_v20 = vpack.c.bf16 %v1737_v16, %v1736_v15  ;;  %v2506_v21 = vpack.c.bf16 %v1755_v19, %v1754_v18 }
  0xbd   : > { %1693 = vmatprep.subr.bf16.mxu0 %v2854_v22  ;;  %v1738_v22 = vld [vmem:[%s3720_s3 + $0x60] sm:$0xff] }
  0xbf   : > { %1608 = vmatpush1.bf16.msra.mxu1 %v2849_v23  ;;  %v1739_v23 = vld [vmem:[%s3720_s3 + $0x68] sm:$0xff] }
  0xc0   : > { %1694 = vmatpush1.bf16.msra.mxu0 %v2852_v24  ;;  %1609 = vmatprep.subr.bf16.mxu1 %v2857_v26  ;;  %v2508_v24 = vpack.c.bf16 %v1739_v23, %v1738_v22  ;;  %v1770_v26 = vld [vmem:[%s3720_s3 + $0x160] sm:$0xff] }
  0xc1   : > { %1695 = vmatprep.subr.bf16.mxu0 %v2860_v27  ;;  %v1771_v27 = vld [vmem:[%s3720_s3 + $0x168] sm:$0xff] }
  0xc2   : > { %v2538_v28 = vpack.c.bf16 %v1771_v27, %v1770_v26 }
  0xc3   : > { %1610 = vmatpush1.bf16.msra.mxu1 %v2855_v34 }
  0xc4   : > { %1696 = vmatpush1.bf16.msra.mxu0 %v2858_v35  ;;  %2515 = vmatprep.subr.bf16.mxu1 %v2514_v39  ;;  %v2510_v35 = vpack.c.bf16 %v1757_v32, %v1756_v29 }
  0xc5   : > { %2483 = vmatprep.subr.bf16.mxu0 %v2482_v36  ;;  %v1740_v36 = vld [vmem:[%s3720_s3 + $0x70] sm:$0xff] }
  0xc6   : > { %1612 = vmatmul.mubr.bf16.vlgmr.msra.gmra.mrb[4].mxu1 %v3155_v31  ;;  %v2512_v40 = vpack.c.bf16 %v1741_v37, %v1740_v36 }
  0xc7   : > { %1698 = vmatmul.mubr.bf16.vlgmr.msra.gmra.mrb[4].mxu0 %v3155_v31  ;;  %2517 = vmatpush3.bf16.msra.mxu1 %v2514_v39  ;;  %v1749_v31 = vld [vmem:[%s3720_s3 + $0xb8] sm:$0xff] }
  0xc8   : > { %2485 = vmatpush3.bf16.msra.mxu0 %v2484_v25  ;;  %2519 = vmatprep.subr.bf16.mxu1 %v2518_v46  ;;  %v2494_v60 = vpack.c.bf16 %v1749_v31, %v1748_v56 }
  0xc9   : > { %2487 = vmatprep.subr.bf16.mxu0 %v2486_v43 }
  0xcb   : > { %2521 = vmatpush3.bf16.msra.mxu1 %v2518_v46 }
  0xcc   : > { %2489 = vmatpush3.bf16.msra.mxu0 %v2488_v51  ;;  %2523 = vmatprep.subr.bf16.mxu1 %v2522_v55 }
  0xcd   : > { %2491 = vmatprep.subr.bf16.mxu0 %v2490_v52 }
  0xcf   : > { %2525 = vmatpush3.bf16.msra.mxu1 %v2522_v55 }
  0xd0   : > { %2493 = vmatpush3.bf16.msra.mxu0 %v2492_v59  ;;  %2527 = vmatprep.subr.bf16.mxu1 %v2526_v63 }
  0xd1   : > { %2495 = vmatprep.subr.bf16.mxu0 %v2494_v60 }
  0xd3   : > { %2529 = vmatpush3.bf16.msra.mxu1 %v2526_v63 }
  0xd4   : > { %2497 = vmatpush3.bf16.msra.mxu0 %v2496_v4  ;;  %2531 = vmatprep.subr.bf16.mxu1 %v2530_v8 }
  0xd5   : > { %2499 = vmatprep.subr.bf16.mxu0 %v2498_v5 }
  0xd7   : > { %2533 = vmatpush3.bf16.msra.mxu1 %v2530_v8 }
  0xd8   : > { %2501 = vmatpush3.bf16.msra.mxu0 %v2500_v13  ;;  %2535 = vmatprep.subr.bf16.mxu1 %v2534_v17 }
  0xd9   : > { %2503 = vmatprep.subr.bf16.mxu0 %v2502_v14 }
  0xdb   : > { %2537 = vmatpush3.bf16.msra.mxu1 %v2534_v17 }
  0xdc   : > { %2505 = vmatpush3.bf16.msra.mxu0 %v2504_v20  ;;  %2539 = vmatprep.subr.bf16.mxu1 %v2538_v28 }
  0xdd   : > { %2507 = vmatprep.subr.bf16.mxu0 %v2506_v21 }
  0xdf   : > { %2541 = vmatpush3.bf16.msra.mxu1 %v2538_v28 }
  0xe0   : > { %2509 = vmatpush3.bf16.msra.mxu0 %v2508_v24  ;;  %2543 = vmatprep.subr.bf16.mxu1 %v2542_v45 }
  0xe1   : > { %2511 = vmatprep.subr.bf16.mxu0 %v2510_v35 }
  0xe3   : > { %2545 = vmatpush3.bf16.msra.mxu1 %v2542_v45  ;;  %v3687_v45 = vld [vmem:[%s3721_s4] ss:$0 sm:$0xff] }
  0xe4   : > { %2513 = vmatpush3.bf16.msra.mxu0 %v2512_v40 }
 0x119   : > { %v1484_v33 = vpop.f32.mrb[0].mxu1 }
 0x11a   : > { %v1527_v34 = vpop.f32.mrb[0].mxu0  ;;  %v1486_v39 = vpop.f32.mrb[1].mxu1 }
 0x11b   : > { %v1528_v38 = vadd.f32 %v1527_v34, %v1484_v33  ;;  %v1529_v30 = vpop.f32.mrb[1].mxu0  ;;  %v1488_v43 = vpop.f32.mrb[2].mxu1 }
 0x11c   : > { %v1530_v25 = vadd.f32 %v1529_v30, %v1486_v39  ;;  %v1531_v44 = vpop.f32.mrb[2].mxu0  ;;  %v1490_v47 = vpop.f32.mrb[3].mxu1 }
 0x11d   : > { %v1532_v46 = vadd.f32 %v1531_v44, %v1488_v43  ;;  %v1533_v48 = vpop.f32.mrb[3].mxu0  ;;  %v1708_v31 = vmul.f32 %v1528_v38, %v1528_v38  ;;  %v2380_v44 = vld [vmem:[%s3721_s4 + $0x1] ss:$0 sm:$0xff] }
 0x11e   : > { %v1534_v49 = vadd.f32 %v1533_v48, %v1490_v47  ;;  %v1709_v52 = vmul.f32 %v1530_v25, %v1530_v25 }
 0x11f   : > { %v1711_v57 = vmul.f32 %v1532_v46, %v1532_v46 }
 0x120   : > { %v1712_v62 = vmul.f32 %v1534_v49, %v1534_v49 }
 0x199   : > { %v1613_v50 = vpop.f32.mrb[4].mxu1 }
 0x19a   : > { %v1699_v51 = vpop.f32.mrb[4].mxu0  ;;  %v1710_v53 = vmul.f32 %v1613_v50, %v1613_v50  ;;  %v1615_v55 = vpop.f32.mrb[5].mxu1 }
 0x19b   : > { %v1715_v54 = vmul.f32 %v1699_v51, %v1699_v51  ;;  %v1701_v56 = vpop.f32.mrb[5].mxu0  ;;  %v1714_v58 = vmul.f32 %v1615_v55, %v1615_v55  ;;  %v1617_v60 = vpop.f32.mrb[6].mxu1 }
 0x19c   : > { %v1716_v59 = vmul.f32 %v1701_v56, %v1701_v56  ;;  %v1703_v61 = vpop.f32.mrb[6].mxu0  ;;  %v1713_v0 = vmul.f32 %v1617_v60, %v1617_v60  ;;  %v1619_v2 = vpop.f32.mrb[7].mxu1 }
 0x19d   : > { %v1721_v63 = vadd.f32 %v1715_v54, %v1709_v52  ;;  %v1718_v1 = vmul.f32 %v1703_v61, %v1703_v61  ;;  %v1705_v3 = vpop.f32.mrb[7].mxu0  ;;  %v1720_v4 = vadd.f32 %v1714_v58, %v1708_v31  ;;  %v1717_v6 = vmul.f32 %v1619_v2, %v1619_v2 }
 0x19e   : > { %v1722_v5 = vadd.f32 %v1716_v59, %v1710_v53  ;;  %v1719_v7 = vmul.f32 %v1705_v3, %v1705_v3 }
 0x19f   : > { %v1724_v8 = vadd.f32 %v1718_v1, %v1712_v62  ;;  %1838 = vmatprep.mubr.f32.mxu0 %v1721_v63  ;;  %v1723_v9 = vadd.f32 %v1717_v6, %v1711_v57 }
 0x1a0   : > { %v1725_v10 = vadd.f32 %v1719_v7, %v1713_v0  ;;  %1839 = vmatmul.mubr.f32.vlgmr.msra.gmra.mrb[8].mxu0 %v1720_v4  ;;  %2479 = vmatprep.mubr.f32.mxu1 %v1722_v5 }
 0x1a1   : > { %1843 = vmatprep.mubr.f32.mxu0 %v1724_v8 }
 0x1a2   : > { %2480 = vmatmul.mubr.f32.vlgmr.msra.gmra.mrb[8].mxu1 %v1725_v10 }
 0x1a4   : > { %1844 = vmatmul.mubr.f32.gmra.mrb[10].mxu0 %v1723_v9 }
 0x273   : > { %v2423_v12 = vpop.f32.mrb[8].mxu0 }
 0x274   : > { %v2424_v13 = vpop.f32.mrb[9].mxu0 }
 0x275   : > { %v2425_v14 = vadd.f32 %v2424_v13, %v2423_v12  ;;  %v2481_v15 = vpop.f32.mrb[8].mxu1 }
 0x276   : > { %v1915_v16 = vpop.f32.mrb[9].mxu1 }
 0x277   : > { %v1916_v17 = vadd.f32 %v2425_v14, %v1915_v16  ;;  %v2426_v18 = vpop.f32.mrb[10].mxu0 }
 0x278   : > { %v2427_v19 = vpop.f32.mrb[11].mxu0 }
 0x279   : > { %v1925_v20 = vsel %vm1924_vm0, %v1916_v17, 0.0  ;;  %v2428_v21 = vadd.f32 %v2427_v19, %v2426_v18 }
 0x27a   : > { %v1926_v22 = vrot.slane %v1925_v20, 4 }
 0x27b   : > { %v1921_v23 = vadd.f32 %v2481_v15, %v2428_v21 }
 0x27c   : > { %v1927_v24 = vadd.f32 %v1926_v22, %v1925_v20 }
 0x27d   : > { %v1932_v26 = vsel %vm1924_vm0, %v1921_v23, 0.0 }
 0x27e   : > { %v1928_v27 = vrot.slane %v1927_v24, 2  ;;  %v1933_v28 = vrot.slane %v1932_v26, 4 }
 0x280   : > { %v1929_v29 = vadd.f32 %v1928_v27, %v1927_v24  ;;  %v1934_v32 = vadd.f32 %v1933_v28, %v1932_v26  ;;  %v2382_v26 = vld [vmem:[%s3721_s4 + $0x2] ss:$0 sm:$0xff] }
 0x282   : > { %v1935_v33 = vrot.slane %v1934_v32, 2  ;;  %v1930_v34 = vrot.slane %v1929_v29, 1 }
 0x284   : > { %v1931_v35 = vadd.f32 %v1930_v34, %v1929_v29  ;;  %v1936_v36 = vadd.f32 %v1935_v33, %v1934_v32  ;;  %v2383_v34 = vld [vmem:[%s3721_s4 + $0x4] ss:$0 sm:$0xff] }
 0x286   : > { %v1939_v37 = vadd.f32 1e-08, %v1931_v35  ;;  %v1937_v38 = vrot.slane %v1936_v36, 1 }
 0x288   : > { %2861 = vrcp.f32 %v1939_v37  ;;  %v1938_v39 = vadd.f32 %v1937_v38, %v1936_v36 }
 0x28a   : > { %v1948_v30 = vadd.f32 1e-08, %v1938_v39  ;;  %v2385_v39 = vld [vmem:[%s3721_s4 + $0x3] ss:$0 sm:$0xff] }
 0x28c   : > { %2863 = vrcp.f32 %v1948_v30 }
 0x292   : > { %v2862_v40 = vpop.eup %2861 }
 0x293   : > { %v1941_v41 = vmul.f32 142087.14, %v2862_v40 }
 0x295   : > { %1944 = vperm.xlu0 %2568, %v1941_v41  }
 0x296   : > { %v2864_v42 = vpop.eup %2863 }
 0x297   : > { %v1950_v25 = vmul.f32 142087.14, %v2864_v42 }
 0x299   : > { %1953 = vperm.xlu1 %2569, %v1950_v25  }
 0x314   : > { %v1945_v43 = vpop.permute.xlu0 %1944 }
 0x315   : > { %v1947_v46 = vmul.f32 %v1945_v43, %v1916_v17 }
 0x317   : > { %vm1963_vm2 = vcmp.gt.f32.partialorder %v1947_v46, %v2380_v44  ;;  %vm2002_vm3 = vcmp.gt.f32.partialorder %v1947_v46, %v3687_v45  ;;  %vm1970_vm4 = vcmp.ge.f32.partialorder %v1947_v46, %v2380_v44 }
 0x318   : > { %v1964_v47 = vsel %vm1963_vm2, %v1947_v46, 0.0  ;;  %v2003_v49 = vsel %vm2002_vm3, %v1947_v46, 0.0  ;;  %v1954_v51 = vpop.permute.xlu1 %1953  ;;  %v1971_v54 = vsel %vm1970_vm4, %v1947_v46, 0.0 }
 0x319   : > { %v1966_v48 = vsel %vm1965_vm1, %v1964_v47, 0.0  ;;  %v2004_v50 = vsel %vm1965_vm1, %v2003_v49, 0.0  ;;  %v1956_v52 = vmul.f32 %v1954_v51, %v1921_v23 }
 0x31a   : > { %1967 = vadd.xlane.f32.xlu0 %v1966_v48 }
 0x31b   : > { %v1972_v55 = vsel %vm1970_vm4, %v1956_v52, 0.0 }
 0x31e   : > { %2005 = vadd.xlane.f32.xlu0 %v2004_v50 }
 0x3a7   : > { %v1968_v53 = vpop.xlane.xlu0 %1967 }
 0x3a8   : > { %vm1969_vm5 = vcmp.ge.f32.partialorder %v1968_v53, 10000000.0 }
 0x3a9   : > { %v1975_v56 = vsel %vm1969_vm5, %v1971_v54, 0.0  ;;  %v1983_v31 = vsel %vm1969_vm5, %v1972_v55, 0.0 }
 0x3aa   : > { %v1976_v57 = vsel %vm1965_vm1, %v1975_v56, 0.0  ;;  %v1984_v58 = vsel %vm1965_vm1, %v1983_v31, 0.0 }
 0x3ab   : > { %v1977_v59 = vrot.slane %v1976_v57, 4  ;;  %v1985_v60 = vrot.slane %v1984_v58, 4  ;;  %v2006_v18 = vpop.xlane.xlu0 %2005 }
 0x3ac   : > { %v2012_v19 = vadd.f32 5000.0, %v2006_v18 }
 0x3ad   : > { %v1986_v61 = vadd.f32 %v1985_v60, %v1984_v58  ;;  %v1978_v62 = vadd.f32 %v1977_v59, %v1976_v57  ;;  %v2386_v57 = vld [vmem:[%s3721_s4 + $0x5] ss:$0 sm:$0xff] }
 0x3af   : > { %v1987_v63 = vrot.slane %v1986_v61, 2  ;;  %v1979_v1 = vrot.slane %v1978_v62, 2 }
 0x3b1   : > { %v1988_v0 = vadd.f32 %v1987_v63, %v1986_v61  ;;  %v1980_v4 = vadd.f32 %v1979_v1, %v1978_v62 }
 0x3b3   : > { %v1989_v2 = vrot.slane %v1988_v0, 1  ;;  %v1981_v6 = vrot.slane %v1980_v4, 1 }
 0x3b5   : > { %v1990_v3 = vadd.f32 %v1989_v2, %v1988_v0  ;;  %v1982_v7 = vadd.f32 %v1981_v6, %v1980_v4  ;;  %v2094_v0 = vadd.f32 100000.0, %v2006_v18 }
 0x3b7   : > { %v1992_v5 = vadd.f32 1000.0, %v1990_v3  ;;  %v1991_v8 = vadd.f32 1000.0, %v1982_v7  ;;  %v2095_v1 = vmul.f32 1e-07, %v2094_v0 }
 0x3b9   : > { %2865 = vrcp.f32 %v1992_v5 }
 0x3c3   : > { %v2866_v9 = vpop.eup %2865 }
 0x3c4   : > { %v1994_v10 = vmul.f32 %v2866_v9, %v1991_v8 }
 0x3c6   : > { %v1995_v11 = vmax.f32 %v1994_v10, 0.01 }
 0x3c8   : > { %v1996_v12 = vmin.f32 %v1995_v11, 100.0 }
 0x3ca   : > { %v1997_v13 = vmul.f32 %v1996_v12, %v1956_v52 }
 0x3cc   : > { %vm2007_vm6 = vcmp.gt.f32.partialorder %v1997_v13, %v3687_v45 }
 0x3cd   : > { %v2008_v14 = vsel %vm2007_vm6, %v1997_v13, 0.0 }
 0x3ce   : > { %v2009_v15 = vsel %vm1965_vm1, %v2008_v14, 0.0 }
 0x3cf   : > { %2010 = vadd.xlane.f32.xlu1 %v2009_v15 }
 0x45c   : > { %v2011_v16 = vpop.xlane.xlu1 %2010 }
 0x45d   : > { %v2013_v17 = vadd.f32 5000.0, %v2011_v16 }
 0x45f   : > { %2867 = vrcp.f32 %v2013_v17 }
 0x469   : > { %v2868_v20 = vpop.eup %2867 }
 0x46a   : > { %v2015_v21 = vmul.f32 %v2868_v20, %v2012_v19 }
 0x46c   : > { %v2016_v22 = vmax.f32 %v2015_v21, 0.0003 }
 0x46e   : > { %v2017_v23 = vmin.f32 %v2016_v22, 5.0 }
 0x470   : > { %v2018_v24 = vmul.f32 %v2017_v23, %v1997_v13 }
 0x472   : > { %2024 = vrot.lane.b32.xlu0 %v2018_v24, %s2894_s28 }
 0x4e4   : > { %v2025_v27 = vpop.permute.xlu0 %2024 }
 0x4e5   : > { %v2027_v28 = vsel %vm1965_vm1, %v1947_v46, %v2025_v27 }
 0x4e6   : > { %v2035_v29 = vmul.f32 %v2382_v26, %v2027_v28  ;;  %2028 = vrot.lane.b32.xlu1 %v2027_v28, %s2894_s28  ;;  %vm2030_vm7 = vcmp.lt.f32.partialorder %v2027_v28, %v3687_v45  ;;  %v2062_v42 = vadd.f32 50.0, %v2027_v28 }
 0x4e8   : > { %v2036_v32 = vadd.f32 0.5, %v2035_v29 }
 0x4ea   : > { %2869 = vlog2.f32 %v2036_v32 }
 0x4f4   : > { %v2870_v33 = vpop.eup %2869 }
 0x4f5   : > { %v2038_v35 = vmul.f32 0.6931472, %v2870_v33 }
 0x4f7   : > { %v2043_v36 = vmul.f32 %v2383_v34, %v2038_v35 }
 0x4f9   : > { %v2044_v37 = vmul.f32 1.442695, %v2043_v36 }
 0x4fb   : > { %2871 = vpow2.f32 %v2044_v37 }
 0x4fc   : > { %2873 = vrcp.f32 %v2062_v42 }
 0x505   : > { %v2872_v38 = vpop.eup %2871 }
 0x506   : > { %v2384_v30 = vadd.f32 -1.0, %v2872_v38  ;;  %v2874_v44 = vpop.eup %2873 }
 0x508   : > { %v2051_v40 = vmul.f32 %v2385_v39, %v2384_v30 }
 0x50a   : > { %v2052_v41 = vsel %vm2030_vm7, 0.0, %v2051_v40 }
 0x50b   : > { %2053 = vrot.lane.b32.xlu1 %v2052_v41, %s2894_s28 }
 0x558   : > { %v2029_v25 = vpop.permute.xlu1 %2028 }
 0x559   : > { %v2061_v43 = vadd.f32 50.0, %v2029_v25 }
 0x55b   : > { %v2064_v46 = vmul.f32 %v2874_v44, %v2061_v43 }
 0x55d   : > { %2875 = vlog2.f32 %v2064_v46 }
 0x567   : > { %v2876_v47 = vpop.eup %2875 }
 0x568   : > { %v2066_v48 = vmul.f32 0.6931472, %v2876_v47 }
 0x56a   : > { %v2067_v49 = vmul.f32 1.2, %v2066_v48 }
 0x56c   : > { %v2068_v50 = vmul.f32 1.442695, %v2067_v49 }
 0x56e   : > { %2877 = vpow2.f32 %v2068_v50 }
 0x56f   : > { %2879 = vlog2.f32 %v2095_v1 }
 0x578   : > { %v2878_v52 = vpop.eup %2877 }
 0x579   : > { %v2071_v56 = vmin.f32 %v2878_v52, 12.0  ;;  %vm2070_vm8 = vcmp.lt.f32.partialorder %v2878_v52, 3.0  ;;  %v2880_v2 = vpop.eup %2879 }
 0x57a   : > { %v2097_v3 = vmul.f32 0.6931472, %v2880_v2 }
 0x57b   : > { %v2072_v59 = vsel %vm2070_vm8, 0.0, %v2071_v56 }
 0x57c   : > { %v2098_v4 = vmul.f32 -0.04, %v2097_v3 }
 0x57d   : > { %v2054_v51 = vpop.permute.xlu1 %2053 }
 0x57e   : > { %v2055_v53 = vsub.f32 %v2054_v51, %v2052_v41  ;;  %v2057_v54 = vmin.f32 %v2052_v41, %v2054_v51  ;;  %v2099_v6 = vmul.f32 1.442695, %v2098_v4 }
 0x580   : > { %v2056_v55 = vand.u32 2147483647, %v2055_v53  ;;  %v2058_v45 = vmul.f32 0.25, %v2057_v54 }
 0x582   : > { %v2059_v31 = vsub.f32 %v2056_v55, %v2058_v45 }
 0x584   : > { %v2060_v58 = vmax.f32 %v2059_v31, 1e-08 }
 0x586   : > { %v2078_v60 = vmul.f32 %v2386_v57, %v2060_v58  ;;  %v2073_v61 = vmul.f32 %v2072_v59, %v2060_v58 }
 0x588   : > { %v2079_v62 = vmul.f32 %v2078_v60, %v2078_v60  ;;  %v2091_v63 = vmul.f32 %v2386_v57, %v2073_v61 }
 0x58a   : > { %2080 = vadd.xlane.f32.xlu0 %v2079_v62  ;;  %2092 = vadd.xlane.f32.xlu1 %v2091_v63 }
 0x617   : > { %v2081_v5 = vpop.xlane.xlu0 %2080  ;;  %v2093_v9 = vpop.xlane.xlu1 %2092 }
 0x618   : > { %v2082_v7 = vadd.f32 4.9e-07, %v2081_v5 }
 0x61a   : > { %2881 = vrsqrt.f32 %v2082_v7  ;;  %vm2085_vm9 = vcmp.eq.f32.partialorder %v2082_v7, inf  ;;  %v2088_v12 = vand.u32 2147483648, %v2082_v7  ;;  %vm2087_vm10 = vcmp.eq.f32.partialorder %v2082_v7, 0.0 }
 0x61b   : > { %2883 = vpow2.f32 %v2099_v6 }
 0x624   : > { %v2882_v8 = vpop.eup %2881 }
 0x625   : > { %v2084_v10 = vmul.f32 %v2882_v8, %v2082_v7  ;;  %v2884_v11 = vpop.eup %2883 }
 0x626   : > { %v2103_v14 = vmul.f32 %v2884_v11, %v2093_v9 }
 0x627   : > { %v2086_v13 = vsel %vm2085_vm9, %v2082_v7, %v2084_v10 }
 0x628   : > { %v2089_v15 = vsel %vm2087_vm10, %v2088_v12, %v2086_v13  ;;  %v2104_v18 = vmin.f32 %v2103_v14, 45.0 }
 0x629   : > { %v2090_v16 = vmul.f32 4.619053, %v2089_v15 }
 0x62a   : > { %v2106_v21 = vmul.f32 0.0309, %v2104_v18 }
 0x62b   : > { %v2101_v17 = vmul.f32 %v2884_v11, %v2090_v16 }
 0x62d   : > { %v2102_v19 = vmin.f32 %v2101_v17, 45.0 }
 0x62f   : > { %v2105_v20 = vmul.f32 0.1, %v2102_v19 }
 0x631   : > { %v2107_v22 = vadd.f32 %v2106_v21, %v2105_v20 }
 0x633   : > { %v2108_v23 = vrot.slane %v2107_v22, 4 }
 0x635   : > { %v2109_v24 = vadd.f32 %v2108_v23, %v2107_v22 }
 0x637   : > { %v2110_v26 = vrot.slane %v2109_v24, 2 }
 0x639   : > { %v2111_v27 = vadd.f32 %v2110_v26, %v2109_v24 }
 0x63b   : > { %v2112_v28 = vrot.slane %v2111_v27, 1 }
 0x63d   : > { %v2113_v29 = vadd.f32 %v2112_v28, %v2111_v27 }
 0x63f   : > { %v2114_v32 = vmul.f32 0.125, %v2113_v29 }
 0x641   : > { %2116 = vst.msk [vmem:[%s240_s14] sm:$0x1] %vm2115_vm11, %v2114_v32 }
 0x642 PF: > { %s15_s18 = sadd.s32 1, %s2891_s18  }
 0x643   : > { %p12_p4 = scmp.ge.s32.totalorder %s15_s18, 4  }
 0x645   :  { %14 = sbr.rel (!%p12_p4) target bundleno = 1 (0x1), region = 73 }

</bundles_post_ra>
